<compile_context>
chip_gen: v6e
topology: v6e:2x2x1
jax: 0.10.0
libtpu: 0.0.40
codegen_flags: <defaults>
</compile_context>

<pallas_src>
import jax
import jax.numpy as jnp
from jax.experimental import pallas as pl
from jax.experimental.pallas import tpu as pltpu


def _silu(v):
    # v is f32. tanh-form sigmoid: single EUP push, rest is cheap VPU work.
    return v * (0.5 * jnp.tanh(0.5 * v) + 0.5)


def timex_kernel(x_ref, emb_ref,
                 w1_ref, b1_ref,
                 w_out_ref, b_out_ref,
                 o_ref):
    # SiLU in f32 for accuracy, then cast operands to the weight dtype so bf16
    # weights hit the full-rate bf16 MXU path; accumulate in f32.
    xs = _silu(x_ref[...].astype(jnp.float32))
    es = _silu(emb_ref[...].astype(jnp.float32))

    # Fused in_layers + emb_layers: one K=(channels+emb_channels) matmul.
    a = jnp.concatenate([xs, es], axis=-1).astype(w1_ref.dtype)
    h = jnp.dot(a, w1_ref[...], preferred_element_type=jnp.float32)
    h = h + b1_ref[...].astype(jnp.float32)          # b1 = b_in + b_emb (pre-added)

    # out_layers: SiLU -> Dropout(p) -> Linear(out_channels, out_channels)
    # TODO(synk): dropout is identity here (eval mode); training-mode dropout
    # would use pltpu.prng_seed + pltpu.prng_random_bits.
    h = _silu(h).astype(w_out_ref.dtype)
    out = jnp.dot(h, w_out_ref[...], preferred_element_type=jnp.float32)
    out = out + b_out_ref[...].astype(jnp.float32)

    o_ref[...] = out.astype(o_ref.dtype)


def _pick_b_tile(B, requested=None):
    """Shape-aware batch tile: keep >= 4 grid steps when possible (>= 2
    pipelined steps per TensorCore on v7x), prefer MXU-height multiples."""
    if requested is not None:
        bt = min(int(requested), B)
        if bt != B:
            bt = max(8, (bt // 8) * 8)
        return bt
    for cand in (512, 256, 128):
        if B >= 4 * cand:
            return cand
    return B  # single block; block_shape == full dim is always legal


def _vmem_budget_bytes():
    """~80% of this generation's physical VMEM (falls back to a safe 64 MiB)."""
    try:
        cap = int(pltpu.get_tpu_info().vmem_capacity_bytes)
    except Exception:
        cap = 64 * 2 ** 20
    return int(cap * 0.8)


def timex_forward(x, emb, params, *, b_tile=None):
    """x: [B, channels], emb: [B, emb_channels] -> [B, out_channels] (x.dtype)."""
    B, channels = x.shape
    emb_channels = emb.shape[1]
    out_channels = params["w_out"].shape[1]
    out_dtype = x.dtype

    bt = _pick_b_tile(B, b_tile)
    grid = (pl.cdiv(B, bt),)   # ragged last block handled by Pallas masking

    # Activations: tiled along batch. Weights/biases: resident (constant map).
    x_spec = pl.BlockSpec((bt, channels), lambda i: (i, 0))
    emb_spec = pl.BlockSpec((bt, emb_channels), lambda i: (i, 0))
    out_spec = pl.BlockSpec((bt, out_channels), lambda i: (i, 0))

    weight_args = (params["w1"], params["b1"],
                   params["w_out"], params["b_out"])

    def nbytes(a):
        return a.size * a.dtype.itemsize

    # Advisory cost estimate (flops, tanh count, HBM bytes).
    flops = (2 * B * out_channels * (channels + emb_channels)
             + 2 * B * out_channels * out_channels)
    transcendentals = B * (channels + emb_channels + out_channels)
    bytes_accessed = (nbytes(x) + nbytes(emb)
                      + sum(nbytes(a) for a in weight_args)
                      + B * out_channels * jnp.dtype(out_dtype).itemsize)
    cost = pl.CostEstimate(flops=int(flops),
                           transcendentals=int(transcendentals),
                           bytes_accessed=int(bytes_accessed))

    # VMEM accounting: 2x (double-buffered) activation in/out tiles, weights
    # counted at 2x for headroom even when single-buffered, plus f32
    # intermediates; capped at ~80% of this generation's physical VMEM.
    itm = x.dtype.itemsize
    act_in_bytes = bt * (channels + emb_channels) * itm
    out_tile_bytes = bt * out_channels * jnp.dtype(out_dtype).itemsize
    weight_bytes = sum(nbytes(a) for a in weight_args)
    interm_bytes = 6 * bt * max(channels + emb_channels, out_channels) * 4
    needed = 2 * (act_in_bytes + out_tile_bytes) + 2 * weight_bytes + interm_bytes
    vmem_limit = int(min(max(needed, 16 * 2 ** 20), _vmem_budget_bytes()))

    def run(single_buffer_weights):
        def resident(a):
            kwargs = {}
            if single_buffer_weights:
                # Constant index map -> no re-DMA; single buffer halves the
                # resident-weight VMEM footprint.
                kwargs["pipeline_mode"] = pl.Buffered(1)
            return pl.BlockSpec(a.shape, lambda i: (0, 0), **kwargs)

        return pl.pallas_call(
            timex_kernel,
            out_shape=jax.ShapeDtypeStruct((B, out_channels), out_dtype),
            grid=grid,
            in_specs=[x_spec, emb_spec] + [resident(a) for a in weight_args],
            out_specs=out_spec,
            compiler_params=pltpu.CompilerParams(
                dimension_semantics=("parallel",),
                vmem_limit_bytes=vmem_limit),
            cost_estimate=cost,
        )(x, emb, *weight_args)

    try:
        return run(True)
    except Exception:
        # TODO(synk): pl.Buffered(1) single-buffering unsupported on this jax
        # version; fall back to default double-buffered resident weights.
        return run(False)


def init_params(key, channels, emb_channels, out_channels, dtype=jnp.bfloat16):
    """Deterministic synthetic init (PyTorch-Linear-like uniform scaling).
    Weights stored [in, out] (transposed vs. torch); biases stored [1, out].
    Also stores the fused first-stage params used by the kernel:
      w1 = concat([w_in, w_emb], axis=0), b1 = b_in + b_emb (kept in f32)."""
    k = jax.random.split(key, 6)

    def lin(kw, kb, fan_in, fan_out):
        bound = 1.0 / jnp.sqrt(fan_in)
        w = jax.random.uniform(kw, (fan_in, fan_out), jnp.float32,
                               -bound, bound).astype(dtype)
        b = jax.random.uniform(kb, (1, fan_out), jnp.float32,
                               -bound, bound).astype(dtype)
        return w, b

    w_in, b_in = lin(k[0], k[1], channels, out_channels)
    w_emb, b_emb = lin(k[2], k[3], emb_channels, out_channels)
    w_out, b_out = lin(k[4], k[5], out_channels, out_channels)

    w1 = jnp.concatenate([w_in, w_emb], axis=0)                    # [C+E, out]
    b1 = b_in.astype(jnp.float32) + b_emb.astype(jnp.float32)      # exact f32 sum

    return dict(w_in=w_in, b_in=b_in, w_emb=w_emb, b_emb=b_emb,
                w_out=w_out, b_out=b_out, w1=w1, b1=b1)


def timex_reference(x, emb, params, compute_dtype=jnp.bfloat16):
    """Pure-JAX reference (unfused layers) mirroring the kernel numerics:
    SiLU in f32, matmul operands in `compute_dtype`, f32 accumulation."""
    f32 = jnp.float32
    silu = lambda v: v * jax.nn.sigmoid(v)
    xs = silu(x.astype(f32)).astype(compute_dtype)
    es = silu(emb.astype(f32)).astype(compute_dtype)
    h = (jnp.dot(xs, params["w_in"].astype(compute_dtype),
                 preferred_element_type=f32) + params["b_in"].astype(f32))
    eo = (jnp.dot(es, params["w_emb"].astype(compute_dtype),
                  preferred_element_type=f32) + params["b_emb"].astype(f32))
    h = h + eo
    hs = silu(h).astype(compute_dtype)
    out = (jnp.dot(hs, params["w_out"].astype(compute_dtype),
                   preferred_element_type=f32) + params["b_out"].astype(f32))
    return out.astype(x.dtype)


if __name__ == "__main__":
    # Small, lane-aligned shapes; B=512 -> b_tile=128 -> grid=(4,), so the
    # pipeline has >= 2 steps per TensorCore even on a 2-TC v7x chip.
    B, channels, emb_channels = 512, 128, 256
    out_channels = channels  # module default: out_channels or channels

    key = jax.random.PRNGKey(0)
    kx, ke, kp = jax.random.split(key, 3)
    # bf16 weights AND bf16 activations -> native MXU path, half the HBM traffic.
    x = jax.random.normal(kx, (B, channels), jnp.float32).astype(jnp.bfloat16)
    emb = jax.random.normal(ke, (B, emb_channels), jnp.float32).astype(jnp.bfloat16)
    params = init_params(kp, channels, emb_channels, out_channels,
                         dtype=jnp.bfloat16)

    out = jax.block_until_ready(timex_forward(x, emb, params))

    ref = timex_reference(x, emb, params, compute_dtype=jnp.bfloat16)
    assert out.shape == (B, out_channels)
    # Kernel and reference share the same casts; remaining differences are
    # summation order + the final bf16 quantization of the output.
    err = jnp.max(jnp.abs(out.astype(jnp.float32) - ref.astype(jnp.float32)))
    assert jnp.allclose(out.astype(jnp.float32), ref.astype(jnp.float32),
                        atol=2e-2, rtol=2e-2), f"mismatch vs reference (max err {err})"

    print("KERNEL_OK")
</pallas_src>

<mosaic_0001>
module attributes {stable_mosaic.version = 11 : i64} {
  func.func @timex_kernel(%arg0: i32, %arg1: memref<128x128xbf16, #tpu.memory_space<vmem>>, %arg2: memref<128x256xbf16, #tpu.memory_space<vmem>>, %arg3: memref<384x128xbf16, #tpu.memory_space<vmem>>, %arg4: memref<1x128xf32, #tpu.memory_space<vmem>>, %arg5: memref<128x128xbf16, #tpu.memory_space<vmem>>, %arg6: memref<1x128xbf16, #tpu.memory_space<vmem>>, %arg7: memref<128x128xbf16, #tpu.memory_space<vmem>>) attributes {dimension_semantics = [#tpu.dimension_semantics<parallel>], iteration_bounds = array<i64: 4>, scalar_prefetch = 0 : i64, scratch_operands = 0 : i64, tpu.core_type = #tpu.core_type<tc>, window_params = [{transform_indices = @transform_0, window_bounds = array<i64: 128, 128>}, {transform_indices = @transform_1, window_bounds = array<i64: 128, 256>}, {pipeline_mode = #tpu.pipeline_mode<synchronous>, transform_indices = @transform_2, window_bounds = array<i64: 384, 128>}, {pipeline_mode = #tpu.pipeline_mode<synchronous>, transform_indices = @transform_3, window_bounds = array<i64: 1, 128>}, {pipeline_mode = #tpu.pipeline_mode<synchronous>, transform_indices = @transform_4, window_bounds = array<i64: 128, 128>}, {pipeline_mode = #tpu.pipeline_mode<synchronous>, transform_indices = @transform_5, window_bounds = array<i64: 1, 128>}, {transform_indices = @transform_6, window_bounds = array<i64: 128, 128>}]} {
    %c0 = arith.constant 0 : index
    %c0_0 = arith.constant 0 : index
    %0 = vector.load %arg1[%c0, %c0_0] : memref<128x128xbf16, #tpu.memory_space<vmem>>, vector<128x128xbf16>
    %1 = arith.extf %0 : vector<128x128xbf16> to vector<128x128xf32>
    %cst = arith.constant 5.000000e-01 : f32
    %2 = vector.broadcast %cst : f32 to vector<128x128xf32>
    %3 = arith.mulf %2, %1 : vector<128x128xf32>
    %4 = math.tanh %3 : vector<128x128xf32>
    %cst_1 = arith.constant 5.000000e-01 : f32
    %5 = vector.broadcast %cst_1 : f32 to vector<128x128xf32>
    %6 = arith.mulf %5, %4 : vector<128x128xf32>
    %cst_2 = arith.constant 5.000000e-01 : f32
    %7 = vector.broadcast %cst_2 : f32 to vector<128x128xf32>
    %8 = arith.addf %6, %7 : vector<128x128xf32>
    %9 = arith.mulf %1, %8 : vector<128x128xf32>
    %c0_3 = arith.constant 0 : index
    %c0_4 = arith.constant 0 : index
    %10 = vector.load %arg2[%c0_3, %c0_4] : memref<128x256xbf16, #tpu.memory_space<vmem>>, vector<128x256xbf16>
    %11 = arith.extf %10 : vector<128x256xbf16> to vector<128x256xf32>
    %cst_5 = arith.constant 5.000000e-01 : f32
    %12 = vector.broadcast %cst_5 : f32 to vector<128x256xf32>
    %13 = arith.mulf %12, %11 : vector<128x256xf32>
    %14 = math.tanh %13 : vector<128x256xf32>
    %cst_6 = arith.constant 5.000000e-01 : f32
    %15 = vector.broadcast %cst_6 : f32 to vector<128x256xf32>
    %16 = arith.mulf %15, %14 : vector<128x256xf32>
    %cst_7 = arith.constant 5.000000e-01 : f32
    %17 = vector.broadcast %cst_7 : f32 to vector<128x256xf32>
    %18 = arith.addf %16, %17 : vector<128x256xf32>
    %19 = arith.mulf %11, %18 : vector<128x256xf32>
    %20 = tpu.concatenate %9, %19 in 1 : vector<128x128xf32>, vector<128x256xf32> -> vector<128x384xf32>
    %21 = arith.truncf %20 : vector<128x384xf32> to vector<128x384xbf16>
    %c0_8 = arith.constant 0 : index
    %c0_9 = arith.constant 0 : index
    %22 = vector.load %arg3[%c0_8, %c0_9] : memref<384x128xbf16, #tpu.memory_space<vmem>>, vector<384x128xbf16>
    %cst_10 = arith.constant dense<0.000000e+00> : vector<128x128xf32>
    %23 = tpu.matmul %21, %22, %cst_10 {dimension_numbers = #tpu.dot_dimension_numbers<[1], [0], [0], [1], [0, 0, 1, 1], [], []>} : vector<128x384xbf16>, vector<384x128xbf16>, vector<128x128xf32> -> vector<128x128xf32>
    %c0_11 = arith.constant 0 : index
    %c0_12 = arith.constant 0 : index
    %24 = vector.load %arg4[%c0_11, %c0_12] : memref<1x128xf32, #tpu.memory_space<vmem>>, vector<1x128xf32>
    %25 = vector.broadcast %24 : vector<1x128xf32> to vector<128x128xf32>
    %26 = arith.addf %23, %25 : vector<128x128xf32>
    %cst_13 = arith.constant 5.000000e-01 : f32
    %27 = vector.broadcast %cst_13 : f32 to vector<128x128xf32>
    %28 = arith.mulf %27, %26 : vector<128x128xf32>
    %29 = math.tanh %28 : vector<128x128xf32>
    %cst_14 = arith.constant 5.000000e-01 : f32
    %30 = vector.broadcast %cst_14 : f32 to vector<128x128xf32>
    %31 = arith.mulf %30, %29 : vector<128x128xf32>
    %cst_15 = arith.constant 5.000000e-01 : f32
    %32 = vector.broadcast %cst_15 : f32 to vector<128x128xf32>
    %33 = arith.addf %31, %32 : vector<128x128xf32>
    %34 = arith.mulf %26, %33 : vector<128x128xf32>
    %35 = arith.truncf %34 : vector<128x128xf32> to vector<128x128xbf16>
    %c0_16 = arith.constant 0 : index
    %c0_17 = arith.constant 0 : index
    %36 = vector.load %arg5[%c0_16, %c0_17] : memref<128x128xbf16, #tpu.memory_space<vmem>>, vector<128x128xbf16>
    %cst_18 = arith.constant dense<0.000000e+00> : vector<128x128xf32>
    %37 = tpu.matmul %35, %36, %cst_18 {dimension_numbers = #tpu.dot_dimension_numbers<[1], [0], [0], [1], [0, 0, 1, 1], [], []>} : vector<128x128xbf16>, vector<128x128xbf16>, vector<128x128xf32> -> vector<128x128xf32>
    %c0_19 = arith.constant 0 : index
    %c0_20 = arith.constant 0 : index
    %38 = vector.load %arg6[%c0_19, %c0_20] : memref<1x128xbf16, #tpu.memory_space<vmem>>, vector<1x128xbf16>
    %39 = arith.extf %38 : vector<1x128xbf16> to vector<1x128xf32>
    %40 = vector.broadcast %39 : vector<1x128xf32> to vector<128x128xf32>
    %41 = arith.addf %37, %40 : vector<128x128xf32>
    %42 = arith.truncf %41 : vector<128x128xf32> to vector<128x128xbf16>
    %c0_21 = arith.constant 0 : index
    %c0_22 = arith.constant 0 : index
    %43 = vector.load %arg7[%c0_21, %c0_22] : memref<128x128xbf16, #tpu.memory_space<vmem>>, vector<128x128xbf16>
    tpu.vector_store %arg7[%c0_21, %c0_22], %42 {strides = array<i32>} : memref<128x128xbf16, #tpu.memory_space<vmem>>, vector<128x128xbf16>,
    return
  }
  func.func @transform_0(%arg0: i32) -> (i32, i32) {
    %c0_i32 = arith.constant 0 : i32
    %c0_i32_0 = arith.constant 0 : i32
    return %arg0, %c0_i32 : i32, i32
  }
  func.func @transform_1(%arg0: i32) -> (i32, i32) {
    %c0_i32 = arith.constant 0 : i32
    %c0_i32_0 = arith.constant 0 : i32
    return %arg0, %c0_i32 : i32, i32
  }
  func.func @transform_2(%arg0: i32) -> (i32, i32) {
    %c0_i32 = arith.constant 0 : i32
    %c0_i32_0 = arith.constant 0 : i32
    %c0_i32_1 = arith.constant 0 : i32
    return %c0_i32, %c0_i32_0 : i32, i32
  }
  func.func @transform_3(%arg0: i32) -> (i32, i32) {
    %c0_i32 = arith.constant 0 : i32
    %c0_i32_0 = arith.constant 0 : i32
    %c0_i32_1 = arith.constant 0 : i32
    return %c0_i32, %c0_i32_0 : i32, i32
  }
  func.func @transform_4(%arg0: i32) -> (i32, i32) {
    %c0_i32 = arith.constant 0 : i32
    %c0_i32_0 = arith.constant 0 : i32
    %c0_i32_1 = arith.constant 0 : i32
    return %c0_i32, %c0_i32_0 : i32, i32
  }
  func.func @transform_5(%arg0: i32) -> (i32, i32) {
    %c0_i32 = arith.constant 0 : i32
    %c0_i32_0 = arith.constant 0 : i32
    %c0_i32_1 = arith.constant 0 : i32
    return %c0_i32, %c0_i32_0 : i32, i32
  }
  func.func @transform_6(%arg0: i32) -> (i32, i32) {
    %c0_i32 = arith.constant 0 : i32
    %c0_i32_0 = arith.constant 0 : i32
    return %arg0, %c0_i32 : i32, i32
  }
}

module attributes {stable_mosaic.version = 11 : i64} {
  func.func @timex_kernel(%arg0: i32, %arg1: memref<128x128xbf16, #tpu.memory_space<vmem>>, %arg2: memref<128x256xbf16, #tpu.memory_space<vmem>>, %arg3: memref<384x128xbf16, #tpu.memory_space<vmem>>, %arg4: memref<1x128xf32, #tpu.memory_space<vmem>>, %arg5: memref<128x128xbf16, #tpu.memory_space<vmem>>, %arg6: memref<1x128xbf16, #tpu.memory_space<vmem>>, %arg7: memref<128x128xbf16, #tpu.memory_space<vmem>>) attributes {dimension_semantics = [#tpu.dimension_semantics<parallel>], iteration_bounds = array<i64: 4>, scalar_prefetch = 0 : i64, scratch_operands = 0 : i64, tpu.core_type = #tpu.core_type<tc>, window_params = [{transform_indices = @transform_0, window_bounds = array<i64: 128, 128>}, {transform_indices = @transform_1, window_bounds = array<i64: 128, 256>}, {pipeline_mode = #tpu.pipeline_mode<synchronous>, transform_indices = @transform_2, window_bounds = array<i64: 384, 128>}, {pipeline_mode = #tpu.pipeline_mode<synchronous>, transform_indices = @transform_3, window_bounds = array<i64: 1, 128>}, {pipeline_mode = #tpu.pipeline_mode<synchronous>, transform_indices = @transform_4, window_bounds = array<i64: 128, 128>}, {pipeline_mode = #tpu.pipeline_mode<synchronous>, transform_indices = @transform_5, window_bounds = array<i64: 1, 128>}, {transform_indices = @transform_6, window_bounds = array<i64: 128, 128>}]} {
    %c0 = arith.constant 0 : index
    %c0_0 = arith.constant 0 : index
    %0 = vector.load %arg1[%c0, %c0_0] : memref<128x128xbf16, #tpu.memory_space<vmem>>, vector<128x128xbf16>
    %1 = arith.extf %0 : vector<128x128xbf16> to vector<128x128xf32>
    %cst = arith.constant 5.000000e-01 : f32
    %2 = vector.broadcast %cst : f32 to vector<128x128xf32>
    %3 = arith.mulf %2, %1 : vector<128x128xf32>
    %4 = math.tanh %3 : vector<128x128xf32>
    %cst_1 = arith.constant 5.000000e-01 : f32
    %5 = vector.broadcast %cst_1 : f32 to vector<128x128xf32>
    %6 = arith.mulf %5, %4 : vector<128x128xf32>
    %cst_2 = arith.constant 5.000000e-01 : f32
    %7 = vector.broadcast %cst_2 : f32 to vector<128x128xf32>
    %8 = arith.addf %6, %7 : vector<128x128xf32>
    %9 = arith.mulf %1, %8 : vector<128x128xf32>
    %c0_3 = arith.constant 0 : index
    %c0_4 = arith.constant 0 : index
    %10 = vector.load %arg2[%c0_3, %c0_4] : memref<128x256xbf16, #tpu.memory_space<vmem>>, vector<128x256xbf16>
    %11 = arith.extf %10 : vector<128x256xbf16> to vector<128x256xf32>
    %cst_5 = arith.constant 5.000000e-01 : f32
    %12 = vector.broadcast %cst_5 : f32 to vector<128x256xf32>
    %13 = arith.mulf %12, %11 : vector<128x256xf32>
    %14 = math.tanh %13 : vector<128x256xf32>
    %cst_6 = arith.constant 5.000000e-01 : f32
    %15 = vector.broadcast %cst_6 : f32 to vector<128x256xf32>
    %16 = arith.mulf %15, %14 : vector<128x256xf32>
    %cst_7 = arith.constant 5.000000e-01 : f32
    %17 = vector.broadcast %cst_7 : f32 to vector<128x256xf32>
    %18 = arith.addf %16, %17 : vector<128x256xf32>
    %19 = arith.mulf %11, %18 : vector<128x256xf32>
    %20 = tpu.concatenate %9, %19 in 1 : vector<128x128xf32>, vector<128x256xf32> -> vector<128x384xf32>
    %21 = arith.truncf %20 : vector<128x384xf32> to vector<128x384xbf16>
    %c0_8 = arith.constant 0 : index
    %c0_9 = arith.constant 0 : index
    %22 = vector.load %arg3[%c0_8, %c0_9] : memref<384x128xbf16, #tpu.memory_space<vmem>>, vector<384x128xbf16>
    %cst_10 = arith.constant dense<0.000000e+00> : vector<128x128xf32>
    %23 = tpu.matmul %21, %22, %cst_10 {dimension_numbers = #tpu.dot_dimension_numbers<[1], [0], [0], [1], [0, 0, 1, 1], [], []>} : vector<128x384xbf16>, vector<384x128xbf16>, vector<128x128xf32> -> vector<128x128xf32>
    %c0_11 = arith.constant 0 : index
    %c0_12 = arith.constant 0 : index
    %24 = vector.load %arg4[%c0_11, %c0_12] : memref<1x128xf32, #tpu.memory_space<vmem>>, vector<1x128xf32>
    %25 = vector.broadcast %24 : vector<1x128xf32> to vector<128x128xf32>
    %26 = arith.addf %23, %25 : vector<128x128xf32>
    %cst_13 = arith.constant 5.000000e-01 : f32
    %27 = vector.broadcast %cst_13 : f32 to vector<128x128xf32>
    %28 = arith.mulf %27, %26 : vector<128x128xf32>
    %29 = math.tanh %28 : vector<128x128xf32>
    %cst_14 = arith.constant 5.000000e-01 : f32
    %30 = vector.broadcast %cst_14 : f32 to vector<128x128xf32>
    %31 = arith.mulf %30, %29 : vector<128x128xf32>
    %cst_15 = arith.constant 5.000000e-01 : f32
    %32 = vector.broadcast %cst_15 : f32 to vector<128x128xf32>
    %33 = arith.addf %31, %32 : vector<128x128xf32>
    %34 = arith.mulf %26, %33 : vector<128x128xf32>
    %35 = arith.truncf %34 : vector<128x128xf32> to vector<128x128xbf16>
    %c0_16 = arith.constant 0 : index
    %c0_17 = arith.constant 0 : index
    %36 = vector.load %arg5[%c0_16, %c0_17] : memref<128x128xbf16, #tpu.memory_space<vmem>>, vector<128x128xbf16>
    %cst_18 = arith.constant dense<0.000000e+00> : vector<128x128xf32>
    %37 = tpu.matmul %35, %36, %cst_18 {dimension_numbers = #tpu.dot_dimension_numbers<[1], [0], [0], [1], [0, 0, 1, 1], [], []>} : vector<128x128xbf16>, vector<128x128xbf16>, vector<128x128xf32> -> vector<128x128xf32>
    %c0_19 = arith.constant 0 : index
    %c0_20 = arith.constant 0 : index
    %38 = vector.load %arg6[%c0_19, %c0_20] : memref<1x128xbf16, #tpu.memory_space<vmem>>, vector<1x128xbf16>
    %39 = arith.extf %38 : vector<1x128xbf16> to vector<1x128xf32>
    %40 = vector.broadcast %39 : vector<1x128xf32> to vector<128x128xf32>
    %41 = arith.addf %37, %40 : vector<128x128xf32>
    %42 = arith.truncf %41 : vector<128x128xf32> to vector<128x128xbf16>
    %c0_21 = arith.constant 0 : index
    %c0_22 = arith.constant 0 : index
    %43 = vector.load %arg7[%c0_21, %c0_22] : memref<128x128xbf16, #tpu.memory_space<vmem>>, vector<128x128xbf16>
    tpu.vector_store %arg7[%c0_21, %c0_22], %42 {strides = array<i32>} : memref<128x128xbf16, #tpu.memory_space<vmem>>, vector<128x128xbf16>,
    return
  }
  func.func @transform_0(%arg0: i32) -> (i32, i32) {
    %c0_i32 = arith.constant 0 : i32
    %c0_i32_0 = arith.constant 0 : i32
    return %arg0, %c0_i32 : i32, i32
  }
  func.func @transform_1(%arg0: i32) -> (i32, i32) {
    %c0_i32 = arith.constant 0 : i32
    %c0_i32_0 = arith.constant 0 : i32
    return %arg0, %c0_i32 : i32, i32
  }
  func.func @transform_2(%arg0: i32) -> (i32, i32) {
    %c0_i32 = arith.constant 0 : i32
    %c0_i32_0 = arith.constant 0 : i32
    %c0_i32_1 = arith.constant 0 : i32
    return %c0_i32, %c0_i32_0 : i32, i32
  }
  func.func @transform_3(%arg0: i32) -> (i32, i32) {
    %c0_i32 = arith.constant 0 : i32
    %c0_i32_0 = arith.constant 0 : i32
    %c0_i32_1 = arith.constant 0 : i32
    return %c0_i32, %c0_i32_0 : i32, i32
  }
  func.func @transform_4(%arg0: i32) -> (i32, i32) {
    %c0_i32 = arith.constant 0 : i32
    %c0_i32_0 = arith.constant 0 : i32
    %c0_i32_1 = arith.constant 0 : i32
    return %c0_i32, %c0_i32_0 : i32, i32
  }
  func.func @transform_5(%arg0: i32) -> (i32, i32) {
    %c0_i32 = arith.constant 0 : i32
    %c0_i32_0 = arith.constant 0 : i32
    %c0_i32_1 = arith.constant 0 : i32
    return %c0_i32, %c0_i32_0 : i32, i32
  }
  func.func @transform_6(%arg0: i32) -> (i32, i32) {
    %c0_i32 = arith.constant 0 : i32
    %c0_i32_0 = arith.constant 0 : i32
    return %arg0, %c0_i32 : i32, i32
  }
}

</mosaic_0001>

<bundles_post_ra>
// kernel: tpu_custom_call.1
= control target key start
LH: loop header
LB: loop body
LE: loop exit
PB: predicated region body
PF: predicated region fallthrough
CT: control target
= control target key end

     0   :  { %s3013_s0 = inlined_call_operand.hbm [shape: bf16[512,128], index: 0, kind: input, shape index: {}]   ;;  %s3014_s1 = inlined_call_operand.hbm [shape: bf16[512,256], index: 1, kind: input, shape index: {}]   ;;  %s3015_s2 = inlined_call_operand.hbm [shape: bf16[384,128], index: 2, kind: input, shape index: {}]   ;;  %s3016_s3 = inlined_call_operand.vmem [shape: f32[1,128], index: 3, kind: input, shape index: {}]   ;;  %s3017_s4 = inlined_call_operand.hbm [shape: bf16[128,128], index: 4, kind: input, shape index: {}]   ;;  %s3018_s5 = inlined_call_operand.vmem [shape: bf16[1,128], index: 5, kind: input, shape index: {}]   ;;  %s3019_s6 = inlined_call_operand.hbm [shape: bf16[512,128], index: 6, kind: output, shape index: {}]  }
   0x1   :  { %3039 = sst [smem:[#allocation17_spill]] %s3013_s0 }
   0x2   :  { %3040 = sst [smem:[#allocation18_spill]] %s3015_s2 }
   0x3   :  { %3041 = sst [smem:[#allocation19_spill]] %s3017_s4 }
   0x4   :  { %11 = vsyncpa [#allocation3], 0 }
   0x5   :  { %13 = vsyncpa [#allocation3 + $0x1], 0 }
   0x6   :  { %14 = vsyncpa [#allocation6], 0 }
   0x7   :  { %16 = vsyncpa [#allocation6 + $0x1], 0 }
   0x8   :  { %17 = vsyncpa [#allocation9], 0 }
   0x9   :  { %18 = vsyncpa [#allocation4], 0 }
   0xa   :  { %20 = vsyncpa [#allocation4 + $0x1], 0  ;;  %s2353_s21 = smov 0   ;;  %s2355_s22 = smov 0  }
   0xb   :  { %s2357_s23 = smov 0   ;;  %s2359_s24 = smov 0  }
   0xc LB: > { %s2374_s25 = sadd.s32 4294967295, %s2305_s24   ;;  %s1545_s26 = sadd.s32 4294967294, %s2305_s24   ;;  %s2305_s24 = sphi %s2359_s24, %s3085_s24   ;;  %s2301_s23 = sphi %s2357_s23, %s3084_s23   ;;  %s2297_s22 = sphi %s2355_s22, %s3083_s22   ;;  %s2293_s21 = sphi %s2353_s21, %s3082_s21  }
   0xd   : > { %p46_p0 = scmp.ne.s32.totalorder %s2297_s22, %s2293_s21  ;;  %p3022_p1 = scmp.eq.s32.totalorder %s2374_s25, 0 }
   0xe   : > { %p180_p2 = scmp.eq.s32.totalorder %s2374_s25, 3  ;;  %p186_p3 = scmp.eq.s32.totalorder %s1545_s26, 3 }
   0xf   : > { %p2383_p4 = por %p3022_p1, %p46_p0  ;;  %p1546_p5 = scmp.ge.s32.totalorder %s2305_s24, 1 }
  0x10   : > { %p2388_p6 = por %p186_p3, %p46_p0  ;;  %p193_p7 = scmp.lt.s32.totalorder %s2305_s24, 5 }
  0x11   : > { %s3042_s27 = scalar_select %p2383_p4, 1, 0 }
  0x12   : > { %s3043_s28 = scalar_select %p2388_p6, 1, 0 }
  0x13   : > { %p2393_p8 = pnand %p1546_p5, %p193_p7  ;;  %s2307_s30 = smov [#allocation7]  }
  0x14   : > { %s205_s7 = sshll.u32 %s2307_s30, 4  ;;  %s2308_s9 = smov [#allocation8]   ;;  %s206_s7 = int_to_ptr.vmem [resolvable:$true] %s205_s7 }
  0x15   : > { %p1897_p9 = pneg %p2393_p8  ;;  %s221_s10 = sshll.u32 %s2308_s9, 4  ;;  %s222_s10 = int_to_ptr.vmem [resolvable:$true] %s221_s10 }
  0x16   : > { %s2132_s11 = scalar_lea.vmem %s206_s7, 3072  ;;  %p2140_p3 = scmp.lt.s32.totalorder %s206_s7, %s206_s7 }
  0x17   : > { %p2401_p10 = pnand %p1897_p9, %p3022_p1  ;;  %p2133_p12 = scmp.ne.s32.totalorder %s206_s7, %s2132_s11 }
  0x18   : > { %p2141_p5 = scmp.lt.s32.totalorder %s2132_s11, %s2132_s11 }
  0x19   : > { %p2123_p11 = pneg %p2401_p10 }
  0x1a   : > { %p2142_p7 = por %p2141_p5, %p2140_p3 }
  0x1b   : > { %p2135_p13 = pnand %p2133_p12, %p2123_p11 }
  0x1d   : > { %p2136_p0 = pneg %p2135_p13 }
  0x1f   : > { %p2143_p9 = pnand %p2142_p7, %p2136_p0 }
  0x21   : > { %2146 = shalt.err (!%p2143_p9)
}
  0x22   : > { %s3020_s12 = smov 64   ;;  %s3021_s13 = smov 4  }
  0x23   : > { %s3046_s2 = sld [smem:[#allocation18_spill]]  ;;  %s2158_s16 = scalar_lea.vmem %s222_s10, 1024 }
  0x24   : > { %p2159_p12 = scmp.ne.s32.totalorder %s222_s10, %s2158_s16  ;;  %p2166_p0 = scmp.lt.s32.totalorder %s222_s10, %s222_s10 }
  0x25   : > { %p2167_p5 = scmp.lt.s32.totalorder %s2158_s16, %s2158_s16 }
  0x26   : > { %p2161_p13 = pnand %p2159_p12, %p2123_p11 }
  0x27   : > { %p2168_p7 = por %p2167_p5, %p2166_p0 }
  0x28   : > { %p2162_p3 = pneg %p2161_p13 }
  0x29   : > { %1900 = dma.hbm_to_vmem [thread:$0]  (!%p2401_p10), %s3046_s2, 3072, %s206_s7, [#allocation6], %s3020_s12, %s3020_s12, %s3021_s13  }
  0x2a   : > { %p2169_p9 = pnand %p2168_p7, %p2162_p3 }
  0x2c   : > { %2172 = shalt.err (!%p2169_p9)
}
  0x2d   : > { %s3047_s4 = sld [smem:[#allocation19_spill]]  ;;  %s2430_s19 = sadd.s32 1, %s2305_s24  }
  0x2e   : > { %s33_s20 = sadd.s32 1, %s2301_s23  ;;  %s30_s26 = ssub.s32 %s2305_s24, %s2430_s19 }
  0x2f   : > { %p40_p11 = scmp.ne.s32.totalorder %s2301_s23, %s2297_s22  ;;  %p31_p12 = scmp.eq.s32.totalorder %s30_s26, 0 }
  0x30   : > { %p41_p13 = scmp.eq.s32.totalorder %s2305_s24, 0  ;;  %p1917_p0 = scmp.lt.s32.totalorder %s2305_s24, 4 }
  0x31   : > { %p2440_p3 = por %p180_p2, %p40_p11  ;;  %s2449_s8 = sand.u32 1, %s2301_s23  }
  0x32   : > { %s2446_s7 = scalar_select %p31_p12, %s2301_s23, %s33_s20  }
  0x33   : > { %1903 = dma.hbm_to_vmem [thread:$0]  (!%p2401_p10), %s3047_s4, 1024, %s222_s10, [#allocation9], %s3020_s12, %s3020_s12, %s3021_s13  }
  0x34   : > { %s3048_s30 = scalar_select %p2440_p3, 1, 0 }
  0x35   : > { %3049 = sst [smem:[#allocation16_spill]] %s2446_s7  ;;  %p42_p5 = por %p41_p13, %p40_p11 }
  0x36   : > { %s1550_s9 = sshll.u32 %s2449_s8, 6  ;;  %s1617_s10 = sshll.u32 %s2305_s24, 10 }
  0x37   : > { %s3050_s0 = sld [smem:[#allocation17_spill]]  ;;  %s242_s16 = scalar_lea.vmem [#allocation2], %s1550_s9 }
  0x38   : > { %s249_s17 = sshll.u32 %s242_s16, 4  ;;  %p2460_p2 = pnand %p1917_p0, %p42_p5  ;;  %s2458_s17 = int_to_ptr.vmem [resolvable:$true] %s249_s17 }
  0x39   : > { %s239_s12 = scalar_lea.sflag [#allocation3], %s2449_s8 }
  0x3a   : > { %p2175_p7 = pneg %p2460_p2 }
  0x3d   : > { %s2456_s15 = scalar_lea.hbm %s3050_s0, %s1617_s10  ;;  %s2178_s11 = scalar_lea.hbm %s3050_s0, 4096 }
  0x3e   : > { %s2173_s13 = scalar_lea.hbm %s2456_s15, 1024  ;;  %p2179_p12 = scmp.lt.s32.totalorder %s2456_s15, %s3050_s0 }
  0x3f   : > { %p2174_p10 = scmp.ne.s32.totalorder %s2456_s15, %s2173_s13  ;;  %p2180_p13 = scmp.lt.s32.totalorder %s2178_s11, %s2173_s13 }
  0x41   : > { %p2176_p9 = pnand %p2175_p7, %p2174_p10  ;;  %p2181_p0 = por %p2180_p13, %p2179_p12 }
  0x43   : > { %p2177_p11 = pneg %p2176_p9 }
  0x45   : > { %p2182_p5 = pnand %p2181_p0, %p2177_p11 }
  0x47   : > { %2185 = shalt.err (!%p2182_p5)
}
  0x48   : > { %s2186_s20 = scalar_lea.vmem %s2458_s17, 1024  ;;  %s2311_s9 = smov [#allocation2]  }
  0x49   : > { %p2187_p1 = scmp.ne.s32.totalorder %s2458_s17, %s2186_s20  ;;  %s2191_s10 = sshll.u32 %s2311_s9, 4  ;;  %s2192_s10 = int_to_ptr.vmem [resolvable:$false] %s2191_s10 }
  0x4a   : > { %s2193_s26 = scalar_lea.vmem %s2192_s10, 2048  ;;  %p2194_p6 = scmp.lt.s32.totalorder %s2458_s17, %s2192_s10 }
  0x4b   : > { %p2189_p10 = pnand %p2187_p1, %p2175_p7  ;;  %p2195_p3 = scmp.lt.s32.totalorder %s2193_s26, %s2186_s20 }
  0x4d   : > { %p2190_p9 = pneg %p2189_p10  ;;  %p2196_p4 = por %p2195_p3, %p2194_p6 }
  0x4f   : > { %p2197_p12 = pnand %p2196_p4, %p2190_p9 }
  0x51   : > { %2200 = shalt.err (!%p2197_p12)
}
  0x52   : > { %s3052_s13 = smov 4   ;;  %s3053_s11 = smov 64  }
  0x53   : > { %1907 = dma.hbm_to_vmem [thread:$0]  (!%p2460_p2), %s2456_s15, 1024, %s2458_s17, %s239_s12, %s3053_s11, %s3053_s11, %s3052_s13  }
  0x54   : > { %s1619_s14 = sshll.u32 %s2305_s24, 11  ;;  %s3054_s9 = sshll.u32 %s2449_s8, 7 }
  0x55   : > { %s2500_s26 = scalar_lea.hbm %s3014_s1, %s1619_s14  ;;  %s263_s10 = scalar_lea.vmem [#allocation5], %s3054_s9 }
  0x56   : > { %s271_s0 = sshll.u32 %s263_s10, 4  ;;  %s3055_s2 = sand.u32 1, %s2305_s24   ;;  %s2504_s0 = int_to_ptr.vmem [resolvable:$true] %s271_s0 }
  0x57   : > { %s2508_s4 = scalar_lea.sflag [#allocation6], %s3055_s2  ;;  %s2201_s7 = scalar_lea.hbm %s2500_s26, 2048 }
  0x58   : > { %p2202_p1 = scmp.ne.s32.totalorder %s2500_s26, %s2201_s7  ;;  %s2206_s8 = scalar_lea.hbm %s3014_s1, 8192 }
  0x59   : > { %p2207_p3 = scmp.lt.s32.totalorder %s2500_s26, %s3014_s1  ;;  %p2208_p11 = scmp.lt.s32.totalorder %s2206_s8, %s2201_s7 }
  0x5a   : > { %p2204_p4 = pnand %p2202_p1, %p2175_p7 }
  0x5b   : > { %p2209_p13 = por %p2208_p11, %p2207_p3 }
  0x5c   : > { %p2205_p6 = pneg %p2204_p4 }
  0x5e   : > { %p2210_p0 = pnand %p2209_p13, %p2205_p6 }
  0x60   : > { %2213 = shalt.err (!%p2210_p0)
}
  0x61   : > { %s2214_s2 = scalar_lea.vmem %s2504_s0, 2048  ;;  %s2312_s11 = smov [#allocation5]  }
  0x62   : > { %p2215_p5 = scmp.ne.s32.totalorder %s2504_s0, %s2214_s2  ;;  %s2219_s14 = sshll.u32 %s2312_s11, 4  ;;  %s2220_s14 = int_to_ptr.vmem [resolvable:$false] %s2219_s14 }
  0x63   : > { %s2221_s16 = scalar_lea.vmem %s2220_s14, 4096  ;;  %p2222_p12 = scmp.lt.s32.totalorder %s2504_s0, %s2220_s14 }
  0x64   : > { %p2217_p10 = pnand %p2215_p5, %p2175_p7  ;;  %p2223_p1 = scmp.lt.s32.totalorder %s2221_s16, %s2214_s2 }
  0x66   : > { %p2218_p9 = pneg %p2217_p10  ;;  %p2224_p4 = por %p2223_p1, %p2222_p12 }
  0x68   : > { %p2225_p3 = pnand %p2224_p4, %p2218_p9 }
  0x6a   : > { %2228 = shalt.err (!%p2225_p3)
}
  0x6b   : > { %s2313_s7 = smov 128   ;;  %s2314_s20 = smov 8  }
  0x6c   : > { %1910 = dma.hbm_to_vmem [thread:$0]  (!%p2460_p2), %s2500_s26, 2048, %s2504_s0, %s2508_s4, %s2313_s7, %s2313_s7, %s2314_s20  }
  0x6d   : > { %283 = sbr.rel (%p2393_p8) target bundleno = 675 (0x2a3), region = 44  ;;  %s2536_s9 = sand.u32 (!%p2393_p8), 1, %s2297_s22  }
  0x6e   : > { %s1558_s10 = sshll.u32 (!%p2393_p8), %s2536_s9, 6  ;;  %s286_s12 = scalar_lea.sflag (!%p2393_p8), [#allocation3], %s2536_s9 }
  0x6f   : > { %s2542_s15 = scalar_lea.vmem (!%p2393_p8), [#allocation2], %s1558_s10  ;;  %p3056_p7 = scmp.ne.s32.totalorder (!%p2393_p8), %s3042_s27, 0 }
  0x72   : > { %2272 = dma.done.wait (%p3056_p7), %s286_s12, 1024  }
  0x73   : > { %2274 = vsyncadd (%p3056_p7), %s286_s12, 4294966272  ;;  %s294_s0 = sand.u32 1, %s2374_s25   ;;  %s1559_s4 = sshll.u32 %s2536_s9, 7 }
  0x74   : > { %s295_s29 = scalar_lea.sflag [#allocation6], %s294_s0  ;;  %s2550_s18 = scalar_lea.vmem [#allocation5], %s1559_s4 }
  0x75   : > { %2276 = dma.done.wait (%p3056_p7), %s295_s29, 2048  }
  0x76   : > { %2278 = vsyncadd (%p3056_p7), %s295_s29, 4294965248  ;;  %p3057_p8 = scmp.eq.s32.totalorder %s2374_s25, 0 }
  0x78   : > { %2280 = dma.done.wait (%p3057_p8), [#allocation6], 3072   ;;  %p3058_p2 = pmov %p3057_p8 }
  0x7a   : > { %2282 = vsyncadd (%p3058_p2), [#allocation6], 4294964224  ;;  %p3059_p6 = pmov %p3058_p2 }
  0x7b   : > { %p3060_p11 = pmov %p3058_p2 }
  0x7c   : > { %2284 = dma.done.wait (%p3059_p6), [#allocation9], 1024  }
  0x7d   : > { %2286 = vsyncadd (%p3060_p11), [#allocation9], 4294966272  ;;  %v1961_v0 = vld [vmem:[#allocation7 + $0x78] sm:$0xff]   ;;  %v1963_v2 = vld [vmem:[#allocation7 + $0x70] sm:$0xff]   ;;  %s2954_s13 = scalar_lea.vmem [#allocation10], %s1558_s10  ;;  %s1636_s11 = sshll.u32 %s2374_s25, 10 }
  0x7e   : > { %v1962_v1 = vld [vmem:[#allocation7 + $0x38] sm:$0xff]   ;;  %1723 = vmatprep.subr.bf16.mxu0 %v1961_v0  ;;  %v1965_v4 = vld [vmem:[#allocation7 + $0x30] sm:$0xff]   ;;  %v1966_v5 = vld [vmem:[#allocation7 + $0x68] sm:$0xff]   ;;  %s1430_s2 = sshll.u32 %s2954_s13, 4  ;;  %s2969_s7 = scalar_lea.hbm %s3019_s6, %s1636_s11  ;;  %s2964_s2 = int_to_ptr.vmem [resolvable:$true] %s1430_s2 }
  0x7f   : > { %1724 = vmatpush3.bf16.msra.mxu0 %v1962_v1  ;;  %v1964_v3 = vld [vmem:[#allocation7 + $0xb8] sm:$0xff]   ;;  %v1967_v6 = vld [vmem:[#allocation7 + $0xb0] sm:$0xff]   ;;  %v1968_v7 = vld [vmem:[#allocation7 + $0x28] sm:$0xff]   ;;  %s1417_s20 = scalar_lea.sflag [#allocation4], %s2536_s9  ;;  %s2229_s10 = scalar_lea.vmem %s2964_s2, 1024 }
  0x80   : > { %1725 = vmatprep.subr.bf16.mxu0 %v1963_v2  ;;  %1819 = vmatprep.subr.bf16.mxu1 %v1964_v3  ;;  %v1969_v8 = vld [vmem:[#allocation7 + $0x60] sm:$0xff]   ;;  %v1970_v9 = vld [vmem:[#allocation7 + $0xa8] sm:$0xff]   ;;  %v1972_v11 = vld [vmem:[#allocation7 + $0x58] sm:$0xff]   ;;  %p2230_p13 = scmp.ne.s32.totalorder %s2964_s2, %s2229_s10  ;;  %p3079_p0 = scmp.ne.s32.totalorder %s3048_s30, 0 }
  0x81   : > { %1820 = vmatpush3.bf16.msra.mxu1 %v1964_v3  ;;  %v1971_v10 = vld [vmem:[#allocation7 + $0x20] sm:$0xff]   ;;  %v1974_v13 = vld [vmem:[#allocation7 + $0x18] sm:$0xff]   ;;  %v1975_v15 = vld [vmem:[#allocation7 + $0x50] sm:$0xff]   ;;  %s2315_s25 = smov [#allocation10]  }
  0x82   : > { %1821 = vmatprep.subr.bf16.mxu1 %v1967_v6  ;;  %v1973_v12 = vld [vmem:[#allocation7 + $0xa0] sm:$0xff]   ;;  %v1976_v14 = vld [vmem:[#allocation7 + $0x98] sm:$0xff]   ;;  %v1977_v16 = vld [vmem:[#allocation7 + $0x10] sm:$0xff]   ;;  %p2231_p5 = pnand %p2230_p13, %p3079_p0  ;;  %s2233_s12 = sshll.u32 %s2315_s25, 4  ;;  %s2234_s12 = int_to_ptr.vmem [resolvable:$false] %s2233_s12 }
  0x83   : > { %1726 = vmatpush3.bf16.msra.mxu0 %v1965_v4  ;;  %v1979_v17 = vld [vmem:[#allocation7 + $0x90] sm:$0xff]   ;;  %v1978_v18 = vld [vmem:[#allocation7 + $0x48] sm:$0xff]   ;;  %v2565_v21 = vld [vmem:[%s2550_s18] sm:$0xff]  ;;  %p2236_p9 = scmp.lt.s32.totalorder %s2964_s2, %s2234_s12 }
  0x84   : > { %1727 = vmatprep.subr.bf16.mxu0 %v1966_v5  ;;  %v1980_v19 = vld [vmem:[#allocation7 + $0x8] sm:$0xff]   ;;  %v2571_v23 = vld [vmem:[%s2542_s15] sm:$0xff]   ;;  %v472_v25 = vunpack.c.l.bf16 %v2565_v21  ;;  %v473_v29 = vunpack.c.h.bf16 %v2565_v21  ;;  %v2580_v31 = vld [vmem:[%s2550_s18 + $0x10] sm:$0xff]  ;;  %p2232_p10 = pneg %p2231_p5 }
  0x85   : > { %1822 = vmatpush3.bf16.msra.mxu1 %v1967_v6  ;;  %v1982_v20 = vld [vmem:[#allocation7 + $0x88] sm:$0xff]   ;;  %v1981_v24 = vld [vmem:[#allocation7 + $0x40] sm:$0xff]   ;;  %v1639_v27 = vunpack.c.l.bf16 %v2571_v23  ;;  %v1640_v28 = vunpack.c.h.bf16 %v2571_v23  ;;  %v2583_v32 = vld [vmem:[%s2550_s18 + $0x18] sm:$0xff]  ;;  %v477_v42 = vunpack.c.h.bf16 %v2580_v31  ;;  %v476_v44 = vunpack.c.l.bf16 %v2580_v31 }
  0x86   : > { %1823 = vmatprep.subr.bf16.mxu1 %v1970_v9  ;;  %v2568_v22 = vld [vmem:[%s2550_s18 + $0x8] sm:$0xff]  ;;  %v504_v34 = vmul.f32 0.5, %v472_v25  ;;  %v1983_v38 = vld [vmem:[#allocation7] sm:$0xff]   ;;  %v505_v40 = vmul.f32 0.5, %v473_v29  ;;  %v479_v43 = vunpack.c.h.bf16 %v2583_v32  ;;  %v478_v45 = vunpack.c.l.bf16 %v2583_v32  ;;  %v2617_v52 = vld [vmem:[%s2542_s15 + $0x10] sm:$0xff]  }
  0x87   : > { %1728 = vmatpush3.bf16.msra.mxu0 %v1968_v7  ;;  %v474_v26 = vunpack.c.l.bf16 %v2568_v22  ;;  %v475_v30 = vunpack.c.h.bf16 %v2568_v22  ;;  %v2586_v33 = vld [vmem:[%s2542_s15 + $0x8] sm:$0xff]   ;;  %v376_v36 = vmul.f32 0.5, %v1639_v27  ;;  %v377_v37 = vmul.f32 0.5, %v1640_v28  ;;  %v1984_v39 = vld [vmem:[#allocation7 + $0x80] sm:$0xff]   ;;  %v2630_v59 = vld [vmem:[%s2550_s18 + $0x30] sm:$0xff] }
  0x88   : > { %1729 = vmatprep.subr.bf16.mxu0 %v1969_v8  ;;  %1993 = vtanh.f32 %v504_v34  ;;  %v1643_v46 = vunpack.c.l.bf16 %v2586_v33  ;;  %v2606_v47 = vld [vmem:[%s2550_s18 + $0x20] sm:$0xff]  ;;  %v2609_v48 = vld [vmem:[%s2550_s18 + $0x28] sm:$0xff]  ;;  %v509_v49 = vmul.f32 0.5, %v477_v42  ;;  %v511_v50 = vmul.f32 0.5, %v479_v43  ;;  %v2633_v60 = vld [vmem:[%s2550_s18 + $0x38] sm:$0xff] }
  0x89   : > { %1824 = vmatpush3.bf16.msra.mxu1 %v1970_v9  ;;  %v506_v35 = vmul.f32 0.5, %v474_v26  ;;  %v507_v41 = vmul.f32 0.5, %v475_v30  ;;  %v1644_v51 = vunpack.c.h.bf16 %v2586_v33  ;;  %v508_v53 = vmul.f32 0.5, %v476_v44  ;;  %v2639_v0 = vld [vmem:[%s2542_s15 + $0x18] sm:$0xff]   ;;  %v2653_v7 = vld [vmem:[%s2550_s18 + $0x40] sm:$0xff]  ;;  %v2656_v8 = vld [vmem:[%s2550_s18 + $0x48] sm:$0xff] }
  0x8a   : > { %1825 = vmatprep.subr.bf16.mxu1 %v1973_v12  ;;  %v510_v54 = vmul.f32 0.5, %v478_v45  ;;  %v378_v55 = vmul.f32 0.5, %v1643_v46  ;;  %v480_v57 = vunpack.c.l.bf16 %v2606_v47  ;;  %v482_v58 = vunpack.c.l.bf16 %v2609_v48 }
  0x8b   : > { %1730 = vmatpush3.bf16.msra.mxu0 %v1971_v10  ;;  %1995 = vtanh.f32 %v506_v35  ;;  %v379_v56 = vmul.f32 0.5, %v1644_v51  ;;  %v1647_v61 = vunpack.c.l.bf16 %v2617_v52  ;;  %v1648_v62 = vunpack.c.h.bf16 %v2617_v52 }
  0x8c   : > { %1731 = vmatprep.subr.bf16.mxu0 %v1972_v11  ;;  %1997 = vtanh.f32 %v376_v36  ;;  %v3038_v63 = vunpack.c.h.bf16 %v2606_v47  ;;  %v512_v1 = vmul.f32 0.5, %v480_v57  ;;  %v514_v2 = vmul.f32 0.5, %v482_v58 }
  0x8d   : > { %1826 = vmatpush3.bf16.msra.mxu1 %v1973_v12  ;;  %1999 = vtanh.f32 %v377_v37  ;;  %v3036_v3 = vunpack.c.h.bf16 %v2609_v48  ;;  %v380_v4 = vmul.f32 0.5, %v1647_v61  ;;  %v381_v5 = vmul.f32 0.5, %v1648_v62  ;;  %v2663_v12 = vld [vmem:[%s2542_s15 + $0x20] sm:$0xff]  }
  0x8e   : > { %1827 = vmatprep.subr.bf16.mxu1 %v1976_v14  ;;  %2001 = vtanh.f32 %v505_v40  ;;  %v513_v6 = vmul.f32 0.5, %v3038_v63  ;;  %v3035_v10 = vunpack.c.h.bf16 %v2630_v59  ;;  %v3033_v11 = vunpack.c.h.bf16 %v2633_v60 }
  0x8f   : > { %1732 = vmatpush3.bf16.msra.mxu0 %v1974_v13  ;;  %2003 = vtanh.f32 %v507_v41  ;;  %v515_v9 = vmul.f32 0.5, %v3036_v3  ;;  %v3032_v13 = vunpack.c.l.bf16 %v2630_v59  ;;  %v3025_v35 = vunpack.c.l.bf16 %v2653_v7 }
  0x90   : > { %1733 = vmatprep.subr.bf16.mxu0 %v1975_v15  ;;  %2005 = vtanh.f32 %v509_v49  ;;  %v3029_v15 = vunpack.c.l.bf16 %v2639_v0  ;;  %v3026_v36 = vunpack.c.l.bf16 %v2656_v8  ;;  %v3028_v37 = vunpack.c.l.bf16 %v2663_v12 }
  0x91   : > { %1828 = vmatpush3.bf16.msra.mxu1 %v1976_v14  ;;  %2007 = vtanh.f32 %v511_v50  ;;  %v3031_v14 = vunpack.c.l.bf16 %v2633_v60  ;;  %v2692_v41 = vmul.f32 0.5, %v3025_v35  ;;  %v3037_v50 = vunpack.c.h.bf16 %v2656_v8 }
  0x92   : > { %1829 = vmatprep.subr.bf16.mxu1 %v1979_v17  ;;  %2009 = vtanh.f32 %v508_v53  ;;  %v2696_v49 = vmul.f32 0.5, %v3026_v36  ;;  %v2700_v53 = vld [vmem:[%s2550_s18 + $0x50] sm:$0xff]  ;;  %v3063_v52 = vunpack.c.h.bf16 %v2630_v59 }
  0x93   : > { %1734 = vmatpush3.bf16.msra.mxu0 %v1977_v16  ;;  %2011 = vtanh.f32 %v510_v54  ;;  %v517_v16 = vmul.f32 0.5, %v3035_v10 }
  0x94   : > { %1735 = vmatprep.subr.bf16.mxu0 %v1978_v18  ;;  %v3027_v18 = vunpack.c.h.bf16 %v2639_v0  ;;  %2013 = vtanh.f32 %v378_v55 }
  0x95   : > { %1830 = vmatpush3.bf16.msra.mxu1 %v1979_v17  ;;  %v519_v17 = vmul.f32 0.5, %v3033_v11  ;;  %2015 = vtanh.f32 %v379_v56  ;;  %v1994_v40 = vpop.eup %1993  ;;  %v2704_v56 = vmul.f32 0.5, %v3028_v37 }
  0x96   : > { %1831 = vmatprep.subr.bf16.mxu1 %v1982_v20  ;;  %v2683_v34 = vmul.f32 0.5, %v3027_v18  ;;  %2017 = vtanh.f32 %v512_v1  ;;  %v568_v55 = vmul.f32 0.5, %v1994_v40 }
  0x97   : > { %1736 = vmatpush3.bf16.msra.mxu0 %v1980_v19  ;;  %v516_v19 = vmul.f32 0.5, %v3032_v13  ;;  %2019 = vtanh.f32 %v514_v2  ;;  %v2711_v2 = vld [vmem:[%s2550_s18 + $0x58] sm:$0xff] }
  0x98   : > { %1737 = vmatprep.subr.bf16.mxu0 %v1981_v24  ;;  %v2679_v24 = vmul.f32 0.5, %v3029_v15  ;;  %v1996_v54 = vpop.eup %1995  ;;  %2021 = vtanh.f32 %v380_v4  ;;  %v2719_v4 = vmul.f32 0.5, %v3037_v50  ;;  %v600_v37 = vadd.f32 0.5, %v568_v55 }
  0x99   : > { %1832 = vmatpush3.bf16.msra.mxu1 %v1982_v20  ;;  %v518_v20 = vmul.f32 0.5, %v3031_v14  ;;  %v1998_v35 = vpop.eup %1997  ;;  %v570_v36 = vmul.f32 0.5, %v1996_v54  ;;  %2023 = vtanh.f32 %v381_v5 }
  0x9a   : > { %1833 = vmatprep.subr.bf16.mxu1 %v1984_v39  ;;  %v2000_v40 = vpop.eup %1999  ;;  %v408_v15 = vmul.f32 0.5, %v1998_v35  ;;  %2025 = vtanh.f32 %v513_v6 }
  0x9b   : > { %1738 = vmatpush3.bf16.msra.mxu0 %v1983_v38  ;;  %v3030_v38 = vunpack.c.h.bf16 %v2663_v12  ;;  %v2002_v14 = vpop.eup %2001  ;;  %v602_v13 = vadd.f32 0.5, %v570_v36  ;;  %v409_v11 = vmul.f32 0.5, %v2000_v40  ;;  %2027 = vtanh.f32 %v515_v9 }
  0x9c   : > { %v2004_v54 = vpop.eup %2003  ;;  %v424_v10 = vadd.f32 0.5, %v408_v15  ;;  %v569_v3 = vmul.f32 0.5, %v2002_v14  ;;  %2029 = vtanh.f32 %v517_v16 }
  0x9d   : > { %1834 = vmatpush3.bf16.msra.mxu1 %v1984_v39  ;;  %v3034_v39 = vunpack.c.h.bf16 %v2653_v7  ;;  %v2708_v1 = vmul.f32 0.5, %v3030_v38  ;;  %v2006_v50 = vpop.eup %2005  ;;  %v634_v35 = vmul.f32 %v602_v13, %v474_v26  ;;  %v425_v6 = vadd.f32 0.5, %v409_v11 }
  0x9e   : > { %v571_v55 = vmul.f32 0.5, %v2004_v54  ;;  %2031 = vtanh.f32 %v519_v17  ;;  %v2008_v38 = vpop.eup %2007  ;;  %v440_v9 = vmul.f32 %v1639_v27, %v424_v10  ;;  %v601_v36 = vadd.f32 0.5, %v569_v3 }
  0x9f   : > { %v2715_v18 = vmul.f32 0.5, %v3034_v39  ;;  %v632_v39 = vmul.f32 %v600_v37, %v472_v25  ;;  %v573_v40 = vmul.f32 0.5, %v2006_v50  ;;  %2033 = vtanh.f32 %v516_v19  ;;  %v2010_v5 = vpop.eup %2009 }
  0xa0   : > { %v441_v25 = vmul.f32 %v1640_v28, %v425_v6  ;;  %v603_v14 = vadd.f32 0.5, %v571_v55  ;;  %v575_v15 = vmul.f32 0.5, %v2008_v38  ;;  %v2012_v16 = vpop.eup %2011  ;;  %v633_v26 = vmul.f32 %v601_v36, %v473_v29 }
  0xa1   : > { %v665_v63 = vpack.c.bf16 %v634_v35, %v632_v39  ;;  %v605_v11 = vadd.f32 0.5, %v573_v40  ;;  %v572_v13 = vmul.f32 0.5, %v2010_v5  ;;  %2035 = vtanh.f32 %v518_v20  ;;  %v2014_v17 = vpop.eup %2013 }
  0xa2   : > { %v664_v27 = vpack.c.bf16 %v441_v25, %v440_v9  ;;  %v635_v3 = vmul.f32 %v603_v14, %v475_v30  ;;  %v607_v10 = vadd.f32 0.5, %v575_v15  ;;  %v574_v19 = vmul.f32 0.5, %v2012_v16  ;;  %v2016_v37 = vpop.eup %2015 }
  0xa3   : > { %919 = vmatprep.mubr.bf16.mxu0 %v665_v63  ;;  %v637_v23 = vmul.f32 %v605_v11, %v477_v42  ;;  %v604_v28 = vadd.f32 0.5, %v572_v13  ;;  %v410_v38 = vmul.f32 0.5, %v2014_v17  ;;  %2037 = vtanh.f32 %v2679_v24  ;;  %v2018_v21 = vpop.eup %2017 }
  0xa4   : > { %920 = vmatmul.mubr.bf16.vlgmr.msra.gmra.mxu0 %v664_v27  ;;  %v666_v29 = vpack.c.bf16 %v635_v3, %v633_v26  ;;  %v639_v63 = vmul.f32 %v607_v10, %v479_v43  ;;  %v606_v20 = vadd.f32 0.5, %v574_v19  ;;  %v411_v39 = vmul.f32 0.5, %v2016_v37  ;;  %v2020_v22 = vpop.eup %2019 }
  0xa5   : > { %v636_v30 = vmul.f32 %v604_v28, %v476_v44  ;;  %v426_v50 = vadd.f32 0.5, %v410_v38  ;;  %v576_v5 = vmul.f32 0.5, %v2018_v21  ;;  %2039 = vtanh.f32 %v2683_v34  ;;  %v2022_v42 = vpop.eup %2021 }
  0xa6   : > { %1835 = vmatprep.mubr.bf16.mxu1 %v666_v29  ;;  %v669_v54 = vpack.c.bf16 %v639_v63, %v637_v23  ;;  %v638_v24 = vmul.f32 %v606_v20, %v478_v45  ;;  %v427_v35 = vadd.f32 0.5, %v411_v39  ;;  %v578_v6 = vmul.f32 0.5, %v2020_v22  ;;  %v2024_v55 = vpop.eup %2023 }
  0xa7   : > { %v442_v43 = vmul.f32 %v1643_v46, %v426_v50  ;;  %v608_v9 = vadd.f32 0.5, %v576_v5  ;;  %v412_v36 = vmul.f32 0.5, %v2022_v42  ;;  %2041 = vtanh.f32 %v2692_v41  ;;  %v2026_v31 = vpop.eup %2025 }
  0xa8   : > { %1836 = vmatmul.mubr.bf16.vlgmr.msra.gmra.mxu1 %v669_v54  ;;  %v668_v44 = vpack.c.bf16 %v638_v24, %v636_v30  ;;  %v443_v34 = vmul.f32 %v1644_v51, %v427_v35  ;;  %v610_v40 = vadd.f32 0.5, %v578_v6  ;;  %v413_v25 = vmul.f32 0.5, %v2024_v55  ;;  %v2028_v32 = vpop.eup %2027 }
  0xa9   : > { %v640_v45 = vmul.f32 %v608_v9, %v480_v57  ;;  %v428_v14 = vadd.f32 0.5, %v412_v36  ;;  %v577_v15 = vmul.f32 0.5, %v2026_v31  ;;  %2043 = vtanh.f32 %v2696_v49  ;;  %v2030_v46 = vpop.eup %2029 }
  0xaa   : > { %927 = vmatprep.mubr.bf16.mxu0 %v668_v44  ;;  %v667_v16 = vpack.c.bf16 %v443_v34, %v442_v43  ;;  %v642_v41 = vmul.f32 %v610_v40, %v482_v58  ;;  %v429_v26 = vadd.f32 0.5, %v413_v25  ;;  %v579_v11 = vmul.f32 0.5, %v2028_v32  ;;  %v2789_v34 = vld [vmem:[%s2550_s18 + $0x68] sm:$0xff] }
  0xab   : > { %v2032_v33 = vpop.eup %2031  ;;  %v444_v51 = vmul.f32 %v1647_v61, %v428_v14  ;;  %v609_v13 = vadd.f32 0.5, %v577_v15  ;;  %v581_v17 = vmul.f32 0.5, %v2030_v46  ;;  %2045 = vtanh.f32 %v2704_v56 }
  0xac   : > { %v2034_v57 = vpop.eup %2033  ;;  %928 = vmatmul.mubr.bf16.gmra.mxu0 %v667_v16  ;;  %v671_v27 = vpack.c.bf16 %v642_v41, %v640_v45  ;;  %v445_v49 = vmul.f32 %v1648_v62, %v429_v26  ;;  %v611_v3 = vadd.f32 0.5, %v579_v11  ;;  %v583_v10 = vmul.f32 0.5, %v2032_v33  ;;  %v2801_v26 = vld [vmem:[%s2542_s15 + $0x30] sm:$0xff]  }
  0xad   : > { %v3061_v58 = vunpack.c.h.bf16 %v2606_v47  ;;  %v613_v37 = vadd.f32 0.5, %v581_v17  ;;  %v580_v23 = vmul.f32 0.5, %v2034_v57  ;;  %2047 = vtanh.f32 %v2708_v1  ;;  %v2770_v47 = vld [vmem:[%s2542_s15 + $0x28] sm:$0xff]  }
  0xae   : > { %v2036_v61 = vpop.eup %2035  ;;  %935 = vmatprep.mubr.bf16.mxu0 %v671_v27  ;;  %v670_v28 = vpack.c.bf16 %v445_v49, %v444_v51  ;;  %v3062_v56 = vunpack.c.h.bf16 %v2609_v48  ;;  %v615_v21 = vadd.f32 0.5, %v583_v10  ;;  %2049 = vtanh.f32 %v2715_v18 }
  0xaf   : > { %v641_v19 = vmul.f32 %v609_v13, %v3061_v58  ;;  %v645_v62 = vmul.f32 %v613_v37, %v3063_v52  ;;  %v582_v29 = vmul.f32 0.5, %v2036_v61  ;;  %v612_v63 = vadd.f32 0.5, %v580_v23 }
  0xb0   : > { %v643_v38 = vmul.f32 %v611_v3, %v3062_v56  ;;  %2051 = vtanh.f32 %v2719_v4  ;;  %v2038_v20 = vpop.eup %2037  ;;  %v3064_v39 = vunpack.c.h.bf16 %v2633_v60  ;;  %v3065_v48 = vunpack.c.h.bf16 %v2700_v53 }
  0xb1   : > { %v3066_v50 = vunpack.c.h.bf16 %v2711_v2  ;;  %v614_v5 = vadd.f32 0.5, %v582_v29  ;;  %v3067_v42 = vunpack.c.l.bf16 %v2630_v59  ;;  %v414_v4 = vmul.f32 0.5, %v2038_v20  ;;  %v2786_v59 = vld [vmem:[%s2550_s18 + $0x60] sm:$0xff] }
  0xb2   : > { %v672_v1 = vpack.c.bf16 %v643_v38, %v641_v19  ;;  %v647_v22 = vmul.f32 %v615_v21, %v3064_v39  ;;  %v525_v30 = vmul.f32 0.5, %v3065_v48  ;;  %v492_v24 = vunpack.c.l.bf16 %v2700_v53  ;;  %v2040_v35 = vpop.eup %2039 }
  0xb3   : > { %v527_v18 = vmul.f32 0.5, %v3066_v50  ;;  %v644_v54 = vmul.f32 %v612_v63, %v3067_v42  ;;  %v494_v55 = vunpack.c.l.bf16 %v2711_v2  ;;  %v1659_v43 = vunpack.c.l.bf16 %v2770_v47  ;;  %v2826_v50 = vld [vmem:[%s2550_s18 + $0x70] sm:$0xff] }
  0xb4   : > { %1839 = vmatprep.mubr.bf16.mxu1 %v672_v1  ;;  %v675_v6 = vpack.c.bf16 %v647_v22, %v645_v62  ;;  %2053 = vtanh.f32 %v525_v30  ;;  %v3068_v9 = vunpack.c.l.bf16 %v2633_v60  ;;  %v415_v31 = vmul.f32 0.5, %v2040_v35  ;;  %v2042_v40 = vpop.eup %2041  ;;  %936 = vmatmul.mubr.bf16.gmra.mxu0 %v670_v28  ;;  %v2831_v35 = vld [vmem:[%s2550_s18 + $0x78] sm:$0xff] }
  0xb5   : > { %v430_v44 = vadd.f32 0.5, %v414_v4  ;;  %2055 = vtanh.f32 %v527_v18  ;;  %v524_v25 = vmul.f32 0.5, %v492_v24  ;;  %v526_v32 = vmul.f32 0.5, %v494_v55 }
  0xb6   : > { %v646_v36 = vmul.f32 %v614_v5, %v3068_v9  ;;  %1840 = vmatmul.mubr.bf16.gmra.mxu1 %v675_v6  ;;  %v1660_v60 = vunpack.c.h.bf16 %v2770_v47  ;;  %v386_v45 = vmul.f32 0.5, %v1659_v43  ;;  %v431_v15 = vadd.f32 0.5, %v415_v31  ;;  %v2044_v11 = vpop.eup %2043 }
  0xb7   : > { %v3069_v46 = vunpack.c.l.bf16 %v2639_v0  ;;  %v584_v41 = vmul.f32 0.5, %v2042_v40  ;;  %2057 = vtanh.f32 %v524_v25  ;;  %v496_v51 = vunpack.c.l.bf16 %v2786_v59 }
  0xb8   : > { %v674_v14 = vpack.c.bf16 %v646_v36, %v644_v54  ;;  %v387_v33 = vmul.f32 0.5, %v1660_v60  ;;  %v498_v13 = vunpack.c.l.bf16 %v2789_v34  ;;  %v3070_v17 = vunpack.c.h.bf16 %v2639_v0  ;;  %v2046_v3 = vpop.eup %2045 }
  0xb9   : > { %v446_v16 = vmul.f32 %v3069_v46, %v430_v44  ;;  %v586_v27 = vmul.f32 0.5, %v2044_v11  ;;  %v616_v49 = vadd.f32 0.5, %v584_v41  ;;  %2059 = vtanh.f32 %v526_v32  ;;  %v2844_v41 = vld [vmem:[%s2542_s15 + $0x38] sm:$0xff]   ;;  %s2235_s15 = scalar_lea.vmem %s2234_s12, 2048 }
  0xba   : > { %943 = vmatprep.mubr.bf16.mxu0 %v674_v14  ;;  %v447_v57 = vmul.f32 %v3070_v17, %v431_v15  ;;  %2061 = vtanh.f32 %v386_v45  ;;  %v528_v10 = vmul.f32 0.5, %v496_v51  ;;  %v530_v58 = vmul.f32 0.5, %v498_v13  ;;  %v2048_v56 = vpop.eup %2047  ;;  %p2237_p12 = scmp.lt.s32.totalorder %s2235_s15, %s2229_s10 }
  0xbb   : > { %v1663_v19 = vunpack.c.l.bf16 %v2801_v26  ;;  %v618_v23 = vadd.f32 0.5, %v586_v27  ;;  %v3071_v61 = vunpack.c.l.bf16 %v2653_v7  ;;  %v416_v0 = vmul.f32 0.5, %v2046_v3  ;;  %v2050_v62 = vpop.eup %2049 }
  0xbc   : > { %v673_v37 = vpack.c.bf16 %v447_v57, %v446_v16  ;;  %2063 = vtanh.f32 %v387_v33  ;;  %v1664_v38 = vunpack.c.h.bf16 %v2801_v26  ;;  %v497_v52 = vunpack.c.h.bf16 %v2786_v59  ;;  %p2238_p1 = por %p2237_p12, %p2236_p9 }
  0xbd   : > { %v648_v28 = vmul.f32 %v616_v49, %v3071_v61  ;;  %v388_v21 = vmul.f32 0.5, %v1663_v19  ;;  %v3072_v29 = vunpack.c.l.bf16 %v2656_v8  ;;  %v417_v20 = vmul.f32 0.5, %v2048_v56  ;;  %v2052_v39 = vpop.eup %2051 }
  0xbe   : > { %v432_v1 = vadd.f32 0.5, %v416_v0  ;;  %2065 = vtanh.f32 %v528_v10  ;;  %944 = vmatmul.mubr.bf16.gmra.mxu0 %v673_v37  ;;  %v585_v22 = vmul.f32 0.5, %v2050_v62  ;;  %v389_v48 = vmul.f32 0.5, %v1664_v38  ;;  %p2239_p4 = pnand %p2238_p1, %p2232_p10 }
  0xbf   : > { %v650_v63 = vmul.f32 %v618_v23, %v3072_v29  ;;  %2067 = vtanh.f32 %v530_v58  ;;  %v499_v30 = vunpack.c.h.bf16 %v2789_v34  ;;  %v433_v5 = vadd.f32 0.5, %v417_v20 }
  0xc0   : > { %v3073_v42 = vunpack.c.l.bf16 %v2663_v12  ;;  %v587_v4 = vmul.f32 0.5, %v2052_v39  ;;  %v617_v6 = vadd.f32 0.5, %v585_v22  ;;  %2069 = vtanh.f32 %v388_v21 }
  0xc1   : > { %v677_v18 = vpack.c.bf16 %v650_v63, %v648_v28  ;;  %v529_v9 = vmul.f32 0.5, %v497_v52  ;;  %v531_v36 = vmul.f32 0.5, %v499_v30  ;;  %v2054_v31 = vpop.eup %2053  ;;  %v3074_v44 = vunpack.c.h.bf16 %v2663_v12 }
  0xc2   : > { %v448_v54 = vmul.f32 %v3073_v42, %v432_v1  ;;  %v619_v25 = vadd.f32 0.5, %v587_v4  ;;  %2071 = vtanh.f32 %v389_v48  ;;  %v501_v32 = vunpack.c.h.bf16 %v2826_v50  ;;  %v2056_v45 = vpop.eup %2055 }
  0xc3   : > { %951 = vmatprep.mubr.bf16.mxu0 %v677_v18  ;;  %v449_v40 = vmul.f32 %v3074_v44, %v433_v5  ;;  %v3075_v14 = vunpack.c.h.bf16 %v2653_v7  ;;  %v589_v46 = vmul.f32 0.5, %v2054_v31  ;;  %2073 = vtanh.f32 %v529_v9 }
  0xc4   : > { %v503_v16 = vunpack.c.h.bf16 %v2831_v35  ;;  %v3076_v33 = vunpack.c.h.bf16 %v2656_v8  ;;  %v591_v12 = vmul.f32 0.5, %v2056_v45  ;;  %2075 = vtanh.f32 %v531_v36  ;;  %v2058_v3 = vpop.eup %2057 }
  0xc5   : > { %v649_v15 = vmul.f32 %v617_v6, %v3075_v14  ;;  %v676_v11 = vpack.c.bf16 %v449_v40, %v448_v54  ;;  %v621_v57 = vadd.f32 0.5, %v589_v46  ;;  %v533_v27 = vmul.f32 0.5, %v501_v32 }
  0xc6   : > { %v651_v17 = vmul.f32 %v619_v25, %v3076_v33  ;;  %v535_v7 = vmul.f32 0.5, %v503_v16  ;;  %v500_v49 = vunpack.c.l.bf16 %v2826_v50  ;;  %v623_v58 = vadd.f32 0.5, %v591_v12  ;;  %v2060_v8 = vpop.eup %2059  ;;  %v1985_v50 = vld [vmem:[#allocation8 + $0x38] sm:$0xff]  }
  0xc7   : > { %v502_v37 = vunpack.c.l.bf16 %v2831_v35  ;;  %v1667_v23 = vunpack.c.l.bf16 %v2844_v41  ;;  %952 = vmatmul.mubr.bf16.gmra.mxu0 %v676_v11  ;;  %v3077_v61 = vunpack.c.h.bf16 %v2700_v53  ;;  %v588_v0 = vmul.f32 0.5, %v2058_v3  ;;  %v2062_v21 = vpop.eup %2061  ;;  %1851 = vmatprep.subr.bf16.mxu1 %v1985_v50  ;;  %v1987_v35 = vld [vmem:[#allocation8 + $0x28] sm:$0xff]  }
  0xc8   : > { %v678_v10 = vpack.c.bf16 %v651_v17, %v649_v15  ;;  %2077 = vtanh.f32 %v533_v27  ;;  %v532_v56 = vmul.f32 0.5, %v500_v49  ;;  %v3078_v62 = vunpack.c.h.bf16 %v2711_v2  ;;  %1852 = vmatpush3.bf16.msra.mxu1 %v1985_v50 }
  0xc9   : > { %v653_v28 = vmul.f32 %v621_v57, %v3077_v61  ;;  %v590_v63 = vmul.f32 0.5, %v2060_v8  ;;  %2079 = vtanh.f32 %v535_v7  ;;  %v534_v20 = vmul.f32 0.5, %v502_v37  ;;  %v2064_v48 = vpop.eup %2063 }
  0xca   : > { %1843 = vmatprep.mubr.bf16.mxu1 %v678_v10  ;;  %v655_v29 = vmul.f32 %v623_v58, %v3078_v62  ;;  %v620_v1 = vadd.f32 0.5, %v588_v0  ;;  %v418_v39 = vmul.f32 0.5, %v2062_v21  ;;  %2081 = vtanh.f32 %v532_v56 }
  0xcb   : > { %v1668_v22 = vunpack.c.h.bf16 %v2844_v41  ;;  %v622_v5 = vadd.f32 0.5, %v590_v63  ;;  %2083 = vtanh.f32 %v534_v20  ;;  %v390_v42 = vmul.f32 0.5, %v1667_v23  ;;  %v2066_v54 = vpop.eup %2065  ;;  %v1990_v41 = vld [vmem:[#allocation8 + $0x10] sm:$0xff]  }
  0xcc   : > { %v681_v18 = vpack.c.bf16 %v655_v29, %v653_v28  ;;  %v652_v4 = vmul.f32 %v620_v1, %v492_v24  ;;  %v419_v6 = vmul.f32 0.5, %v2064_v48  ;;  %v434_v9 = vadd.f32 0.5, %v418_v39  ;;  %v2068_v31 = vpop.eup %2067 }
  0xcd   : > { %v391_v36 = vmul.f32 0.5, %v1668_v22  ;;  %v654_v44 = vmul.f32 %v622_v5, %v494_v55  ;;  %v592_v40 = vmul.f32 0.5, %v2066_v54  ;;  %2085 = vtanh.f32 %v390_v42  ;;  %v2070_v53 = vpop.eup %2069 }
  0xce   : > { %1844 = vmatmul.mubr.bf16.gmra.mxu1 %v681_v18  ;;  %v435_v25 = vadd.f32 0.5, %v419_v6  ;;  %v450_v45 = vmul.f32 %v1659_v43, %v434_v9  ;;  %v594_v14 = vmul.f32 0.5, %v2068_v31  ;;  %v420_v17 = vmul.f32 0.5, %v2070_v53 }
  0xcf   : > { %2087 = vtanh.f32 %v391_v36  ;;  %v680_v24 = vpack.c.bf16 %v654_v44, %v652_v4  ;;  %v624_v15 = vadd.f32 0.5, %v592_v40  ;;  %v2072_v46 = vpop.eup %2071  ;;  %v1989_v40 = vld [vmem:[#allocation8 + $0x18] sm:$0xff]  }
  0xd0   : > { %v451_v11 = vmul.f32 %v1660_v60, %v435_v25  ;;  %v626_v33 = vadd.f32 0.5, %v594_v14  ;;  %v2074_v12 = vpop.eup %2073  ;;  %v421_v55 = vmul.f32 0.5, %v2072_v46  ;;  %v436_v7 = vadd.f32 0.5, %v420_v17  ;;  %v2903_v14 = vld [vmem:[%s3016_s3] ss:$0 sm:$0xff] }
  0xd1   : > { %959 = vmatprep.mubr.bf16.mxu0 %v680_v24  ;;  %v656_v2 = vmul.f32 %v624_v15, %v496_v51  ;;  %v2076_v57 = vpop.eup %2075  ;;  %v593_v3 = vmul.f32 0.5, %v2074_v12 }
  0xd2   : > { %v679_v27 = vpack.c.bf16 %v451_v11, %v450_v45  ;;  %v658_v43 = vmul.f32 %v626_v33, %v498_v13  ;;  %v437_v10 = vadd.f32 0.5, %v421_v55  ;;  %v595_v58 = vmul.f32 0.5, %v2076_v57 }
  0xd3   : > { %v452_v60 = vmul.f32 %v1663_v19, %v436_v7  ;;  %v625_v8 = vadd.f32 0.5, %v593_v3 }
  0xd4   : > { %960 = vmatmul.mubr.bf16.gmra.mxu0 %v679_v27  ;;  %v683_v47 = vpack.c.bf16 %v658_v43, %v656_v2  ;;  %v453_v51 = vmul.f32 %v1664_v38, %v437_v10  ;;  %v627_v28 = vadd.f32 0.5, %v595_v58 }
  0xd5   : > { %v2078_v61 = vpop.eup %2077  ;;  %v657_v13 = vmul.f32 %v625_v8, %v497_v52 }
  0xd6   : > { %v2080_v0 = vpop.eup %2079  ;;  %967 = vmatprep.mubr.bf16.mxu0 %v683_v47  ;;  %v597_v56 = vmul.f32 0.5, %v2078_v61  ;;  %v659_v62 = vmul.f32 %v627_v28, %v499_v30  ;;  %v682_v20 = vpack.c.bf16 %v453_v51, %v452_v60 }
  0xd7   : > { %v2082_v21 = vpop.eup %2081  ;;  %v599_v29 = vmul.f32 0.5, %v2080_v0 }
  0xd8   : > { %v2084_v63 = vpop.eup %2083  ;;  %v629_v19 = vadd.f32 0.5, %v597_v56  ;;  %v596_v1 = vmul.f32 0.5, %v2082_v21  ;;  %v684_v39 = vpack.c.bf16 %v659_v62, %v657_v13 }
  0xd9   : > { %v631_v48 = vadd.f32 0.5, %v599_v29  ;;  %v598_v26 = vmul.f32 0.5, %v2084_v63 }
  0xda   : > { %v2086_v38 = vpop.eup %2085  ;;  %v661_v18 = vmul.f32 %v629_v19, %v501_v32  ;;  %v628_v5 = vadd.f32 0.5, %v596_v1  ;;  %1847 = vmatprep.mubr.bf16.mxu1 %v684_v39 }
  0xdb   : > { %v663_v52 = vmul.f32 %v631_v48, %v503_v16  ;;  %v630_v34 = vadd.f32 0.5, %v598_v26  ;;  %v422_v30 = vmul.f32 0.5, %v2086_v38 }
  0xdc   : > { %v2088_v59 = vpop.eup %2087  ;;  %968 = vmatmul.mubr.bf16.gmra.mxu0 %v682_v20  ;;  %v660_v42 = vmul.f32 %v628_v5, %v500_v49  ;;  %v1986_v49 = vld [vmem:[#allocation8 + $0x30] sm:$0xff]  }
  0xdd   : > { %v423_v54 = vmul.f32 0.5, %v2088_v59  ;;  %v687_v4 = vpack.c.bf16 %v663_v52, %v661_v18  ;;  %v662_v6 = vmul.f32 %v630_v34, %v502_v37  ;;  %v438_v9 = vadd.f32 0.5, %v422_v30  ;;  %1853 = vmatprep.subr.bf16.mxu1 %v1986_v49  ;;  %v1988_v37 = vld [vmem:[#allocation8 + $0x20] sm:$0xff]  }
  0xde   : > { %1854 = vmatpush3.bf16.msra.mxu1 %v1986_v49 }
  0xdf   : > { %v439_v36 = vadd.f32 0.5, %v423_v54  ;;  %1848 = vmatmul.mubr.bf16.gmra.mxu1 %v687_v4  ;;  %v686_v32 = vpack.c.bf16 %v662_v6, %v660_v42  ;;  %v454_v31 = vmul.f32 %v1667_v23, %v438_v9  ;;  %1855 = vmatprep.subr.bf16.mxu1 %v1987_v35  ;;  %v1991_v23 = vld [vmem:[#allocation8 + $0x8] sm:$0xff]  }
  0xe1   : > { %v455_v16 = vmul.f32 %v1668_v22, %v439_v36  ;;  %975 = vmatprep.mubr.bf16.mxu0 %v686_v32  ;;  %v1992_v22 = vld [vmem:[#allocation8] sm:$0xff]  }
  0xe2   : > { %1856 = vmatpush3.bf16.msra.mxu1 %v1987_v35 }
  0xe3   : > { %v685_v44 = vpack.c.bf16 %v455_v16, %v454_v31  ;;  %1857 = vmatprep.subr.bf16.mxu1 %v1988_v37 }
  0xe5   : > { %976 = vmatmul.mubr.bf16.gmra.mxu0 %v685_v44 }
  0xe6   : > { %1858 = vmatpush3.bf16.msra.mxu1 %v1988_v37 }
  0xe7   : > { %1859 = vmatprep.subr.bf16.mxu1 %v1989_v40 }
  0xea   : > { %1860 = vmatpush3.bf16.msra.mxu1 %v1989_v40 }
  0xeb   : > { %1861 = vmatprep.subr.bf16.mxu1 %v1990_v41 }
  0xee   : > { %1862 = vmatpush3.bf16.msra.mxu1 %v1990_v41 }
  0xef   : > { %1863 = vmatprep.subr.bf16.mxu1 %v1991_v23 }
  0xf2   : > { %1864 = vmatpush3.bf16.msra.mxu1 %v1991_v23 }
  0xf3   : > { %1865 = vmatprep.subr.bf16.mxu1 %v1992_v22 }
  0xf6   : > { %1866 = vmatpush3.bf16.msra.mxu1 %v1992_v22 }
 0x164   : > { %v1739_v25 = vpop.f32.mrf.mxu0 }
 0x166   : > { %v1740_v45 = vpop.f32.mrf.mxu0 }
 0x167   : > { %v1741_v53 = vadd.f32 %v1740_v45, %v1739_v25 }
 0x168   : > { %v1742_v24 = vpop.f32.mrf.mxu0  ;;  %v1837_v15 = vpop.f32.mrf.mxu1 }
 0x169   : > { %v922_v46 = vadd.f32 %v1741_v53, %v2903_v14 }
 0x16a   : > { %v1743_v11 = vpop.f32.mrf.mxu0  ;;  %v1018_v33 = vpop.f32.mrf.mxu1 }
 0x16b   : > { %v1744_v17 = vadd.f32 %v1743_v11, %v1742_v24  ;;  %v1019_v12 = vadd.f32 %v1018_v33, %v922_v46 }
 0x16c   : > { %v1745_v2 = vpop.f32.mrf.mxu0  ;;  %v1838_v55 = vpop.f32.mrf.mxu1 }
 0x16d   : > { %v1081_v57 = vmul.f32 0.5, %v1019_v12  ;;  %v925_v27 = vadd.f32 %v1744_v17, %v2903_v14 }
 0x16e   : > { %v1746_v43 = vpop.f32.mrf.mxu0  ;;  %v1021_v7 = vpop.f32.mrf.mxu1 }
 0x16f   : > { %2089 = vtanh.f32 %v1081_v57  ;;  %v1747_v3 = vadd.f32 %v1746_v43, %v1745_v2  ;;  %v1022_v10 = vadd.f32 %v1021_v7, %v925_v27 }
 0x170   : > { %v1748_v58 = vpop.f32.mrf.mxu0 }
 0x171   : > { %v930_v47 = vadd.f32 %v1747_v3, %v2903_v14  ;;  %v1082_v60 = vmul.f32 0.5, %v1022_v10 }
 0x172   : > { %v1749_v8 = vpop.f32.mrf.mxu0 }
 0x173   : > { %v2908_v61 = vadd.f32 %v1837_v15, %v930_v47  ;;  %2091 = vtanh.f32 %v1082_v60  ;;  %v1750_v51 = vadd.f32 %v1749_v8, %v1748_v58 }
 0x174   : > { %v1751_v28 = vpop.f32.mrf.mxu0 }
 0x175   : > { %v1083_v13 = vmul.f32 0.5, %v2908_v61  ;;  %v933_v56 = vadd.f32 %v1750_v51, %v2903_v14 }
 0x176   : > { %v1841_v0 = vpop.f32.mrf.mxu1  ;;  %v1752_v21 = vpop.f32.mrf.mxu0 }
 0x177   : > { %2093 = vtanh.f32 %v1083_v13  ;;  %v1030_v29 = vadd.f32 %v1838_v55, %v933_v56  ;;  %v1753_v63 = vadd.f32 %v1752_v21, %v1751_v28 }
 0x178   : > { %v1034_v62 = vpop.f32.mrf.mxu1  ;;  %v1754_v20 = vpop.f32.mrf.mxu0 }
 0x179   : > { %v1084_v1 = vmul.f32 0.5, %v1030_v29  ;;  %v938_v39 = vadd.f32 %v1753_v63, %v2903_v14 }
 0x17a   : > { %v1842_v19 = vpop.f32.mrf.mxu1  ;;  %v1755_v48 = vpop.f32.mrf.mxu0 }
 0x17b   : > { %2095 = vtanh.f32 %v1084_v1  ;;  %v1756_v26 = vadd.f32 %v1755_v48, %v1754_v20  ;;  %v2913_v38 = vadd.f32 %v1034_v62, %v938_v39 }
 0x17c   : > { %v2090_v18 = vpop.eup %2089  ;;  %v1037_v59 = vpop.f32.mrf.mxu1 }
 0x17d   : > { %v1085_v52 = vmul.f32 0.5, %v2913_v38  ;;  %v941_v34 = vadd.f32 %v1756_v26, %v2903_v14  ;;  %v1113_v30 = vmul.f32 0.5, %v2090_v18 }
 0x17e   : > { %v1757_v5 = vpop.f32.mrf.mxu0 }
 0x17f   : > { %2097 = vtanh.f32 %v1085_v52  ;;  %v1038_v4 = vadd.f32 %v1037_v59, %v941_v34  ;;  %v1129_v16 = vadd.f32 0.5, %v1113_v30 }
 0x180   : > { %v1758_v42 = vpop.f32.mrf.mxu0  ;;  %v2092_v6 = vpop.eup %2091 }
 0x181   : > { %v1759_v54 = vadd.f32 %v1758_v42, %v1757_v5  ;;  %v1114_v36 = vmul.f32 0.5, %v2092_v6  ;;  %v1086_v31 = vmul.f32 0.5, %v1038_v4  ;;  %v1145_v45 = vmul.f32 %v1129_v16, %v1019_v12 }
 0x182   : > { %v1760_v9 = vpop.f32.mrf.mxu0 }
 0x183   : > { %v946_v32 = vadd.f32 %v1759_v54, %v2903_v14  ;;  %v1130_v50 = vadd.f32 0.5, %v1114_v36  ;;  %2099 = vtanh.f32 %v1086_v31 }
 0x184   : > { %v1761_v44 = vpop.f32.mrf.mxu0  ;;  %v2094_v37 = vpop.eup %2093 }
 0x185   : > { %v2918_v49 = vadd.f32 %v1841_v0, %v946_v32  ;;  %v1762_v35 = vadd.f32 %v1761_v44, %v1760_v9  ;;  %v1115_v41 = vmul.f32 0.5, %v2094_v37  ;;  %v1146_v23 = vmul.f32 %v1130_v50, %v1022_v10 }
 0x187   : > { %v1763_v40 = vpop.f32.mrf.mxu0  ;;  %v1087_v22 = vmul.f32 0.5, %v2918_v49  ;;  %v949_v25 = vadd.f32 %v1762_v35, %v2903_v14  ;;  %v1161_v33 = vpack.c.bf16 %v1146_v23, %v1145_v45  ;;  %v1131_v17 = vadd.f32 0.5, %v1115_v41 }
 0x188   : > { %v2096_v46 = vpop.eup %2095 }
 0x189   : > { %v1764_v53 = vpop.f32.mrf.mxu0  ;;  %2101 = vtanh.f32 %v1087_v22  ;;  %v2922_v24 = vadd.f32 %v1842_v19, %v949_v25  ;;  %v1116_v2 = vmul.f32 0.5, %v2096_v46  ;;  %1867 = vmatprep.mubr.bf16.mxu1 %v1161_v33  ;;  %v1147_v47 = vmul.f32 %v1131_v17, %v2908_v61 }
 0x18a   : > { %v1765_v15 = vadd.f32 %v1764_v53, %v1763_v40 }
 0x18b   : > { %v1766_v11 = vpop.f32.mrf.mxu0  ;;  %v1088_v55 = vmul.f32 0.5, %v2922_v24  ;;  %v1132_v7 = vadd.f32 0.5, %v1116_v2 }
 0x18c   : > { %v954_v27 = vadd.f32 %v1765_v15, %v2903_v14  ;;  %v2098_v10 = vpop.eup %2097 }
 0x18d   : > { %v1767_v43 = vpop.f32.mrf.mxu0  ;;  %2103 = vtanh.f32 %v1088_v55  ;;  %v1148_v60 = vmul.f32 %v1132_v7, %v1030_v29  ;;  %v1117_v8 = vmul.f32 0.5, %v2098_v10 }
 0x18e   : > { %v1845_v57 = vpop.f32.mrf.mxu1  ;;  %v1768_v12 = vadd.f32 %v1767_v43, %v1766_v11 }
 0x18f   : > { %v1162_v13 = vpack.c.bf16 %v1148_v60, %v1147_v47  ;;  %v1133_v20 = vadd.f32 0.5, %v1117_v8 }
 0x190   : > { %v1050_v3 = vpop.f32.mrf.mxu1  ;;  %v957_v28 = vadd.f32 %v1768_v12, %v2903_v14  ;;  %v2100_v21 = vpop.eup %2099 }
 0x191   : > { %v2926_v58 = vadd.f32 %v1050_v3, %v954_v27  ;;  %v1118_v19 = vmul.f32 0.5, %v2100_v21  ;;  %1868 = vmatmul.mubr.bf16.vlgmr.msra.gmra.mxu1 %v1162_v13  ;;  %v1149_v18 = vmul.f32 %v1133_v20, %v2913_v38 }
 0x192   : > { %v1846_v51 = vpop.f32.mrf.mxu1 }
 0x193   : > { %v1089_v0 = vmul.f32 0.5, %v2926_v58  ;;  %v1134_v29 = vadd.f32 0.5, %v1118_v19 }
 0x194   : > { %v1053_v56 = vpop.f32.mrf.mxu1  ;;  %v1769_v62 = vpop.f32.mrf.mxu0 }
 0x195   : > { %2105 = vtanh.f32 %v1089_v0  ;;  %v2931_v63 = vadd.f32 %v1053_v56, %v957_v28  ;;  %v1150_v5 = vmul.f32 %v1134_v29, %v1038_v4 }
 0x196   : > { %v1770_v1 = vpop.f32.mrf.mxu0  ;;  %v2102_v48 = vpop.eup %2101 }
 0x197   : > { %v1090_v61 = vmul.f32 0.5, %v2931_v63  ;;  %v1771_v39 = vadd.f32 %v1770_v1, %v1769_v62  ;;  %v1119_v52 = vmul.f32 0.5, %v2102_v48  ;;  %v1163_v54 = vpack.c.bf16 %v1150_v5, %v1149_v18 }
 0x198   : > { %v1772_v26 = vpop.f32.mrf.mxu0 }
 0x199   : > { %2107 = vtanh.f32 %v1090_v61  ;;  %v962_v59 = vadd.f32 %v1771_v39, %v2903_v14  ;;  %1871 = vmatprep.mubr.bf16.mxu1 %v1163_v54  ;;  %v1135_v16 = vadd.f32 0.5, %v1119_v52 }
 0x19a   : > { %v1773_v34 = vpop.f32.mrf.mxu0  ;;  %v2104_v6 = vpop.eup %2103 }
 0x19b   : > { %v2936_v30 = vadd.f32 %v1845_v57, %v962_v59  ;;  %v1774_v42 = vadd.f32 %v1773_v34, %v1772_v26  ;;  %v1120_v31 = vmul.f32 0.5, %v2104_v6  ;;  %v1151_v25 = vmul.f32 %v1135_v16, %v2918_v49 }
 0x19c   : > { %v1775_v9 = vpop.f32.mrf.mxu0 }
 0x19d   : > { %v1091_v36 = vmul.f32 0.5, %v2936_v30  ;;  %v965_v32 = vadd.f32 %v1774_v42, %v2903_v14  ;;  %v1136_v35 = vadd.f32 0.5, %v1120_v31 }
 0x19e   : > { %v1776_v44 = vpop.f32.mrf.mxu0 }
 0x19f   : > { %2109 = vtanh.f32 %v1091_v36  ;;  %v1062_v38 = vadd.f32 %v1846_v51, %v965_v32  ;;  %v1777_v4 = vadd.f32 %v1776_v44, %v1775_v9  ;;  %v1849_v50 = vpop.f32.mrf.mxu1  ;;  %v1152_v45 = vmul.f32 %v1136_v35, %v2922_v24 }
 0x1a0   : > { %v1778_v37 = vpop.f32.mrf.mxu0 }
 0x1a1   : > { %v1092_v41 = vmul.f32 0.5, %v1062_v38  ;;  %v970_v23 = vadd.f32 %v1777_v4, %v2903_v14  ;;  %v1066_v22 = vpop.f32.mrf.mxu1  ;;  %v1164_v17 = vpack.c.bf16 %v1152_v45, %v1151_v25 }
 0x1a2   : > { %v2106_v40 = vpop.eup %2105  ;;  %v1779_v15 = vpop.f32.mrf.mxu0 }
 0x1a3   : > { %v1121_v53 = vmul.f32 0.5, %v2106_v40  ;;  %2111 = vtanh.f32 %v1092_v41  ;;  %v1780_v46 = vadd.f32 %v1779_v15, %v1778_v37  ;;  %v1067_v11 = vadd.f32 %v1066_v22, %v970_v23  ;;  %v1850_v33 = vpop.f32.mrf.mxu1  ;;  %1872 = vmatmul.mubr.bf16.gmra.mxu1 %v1164_v17  ;;  %v1185_v41 = vld [vmem:[%s3018_s5] sm:$0x1] }
 0x1a4   : > { %v1186_v23 = vunpack.c.l.bf16 %v1185_v41 }
 0x1a5   : > { %v1781_v2 = vpop.f32.mrf.mxu0  ;;  %v1093_v57 = vmul.f32 0.5, %v1067_v11  ;;  %v973_v27 = vadd.f32 %v1780_v46, %v2903_v14  ;;  %v1069_v43 = vpop.f32.mrf.mxu1  ;;  %v1137_v7 = vadd.f32 0.5, %v1121_v53 }
 0x1a6   : > { %v2108_v55 = vpop.eup %2107 }
 0x1a7   : > { %v1122_v12 = vmul.f32 0.5, %v2108_v55  ;;  %v1782_v3 = vpop.f32.mrf.mxu0  ;;  %2113 = vtanh.f32 %v1093_v57  ;;  %v1070_v24 = vadd.f32 %v1069_v43, %v973_v27  ;;  %v1153_v51 = vmul.f32 %v1137_v7, %v2926_v58 }
 0x1a8   : > { %v1783_v49 = vadd.f32 %v1782_v3, %v1781_v2 }
 0x1a9   : > { %v1138_v10 = vadd.f32 0.5, %v1122_v12  ;;  %v1784_v47 = vpop.f32.mrf.mxu0  ;;  %v1094_v8 = vmul.f32 0.5, %v1070_v24 }
 0x1aa   : > { %v978_v60 = vadd.f32 %v1783_v49, %v2903_v14 }
 0x1ab   : > { %v1154_v28 = vmul.f32 %v1138_v10, %v2931_v63  ;;  %v1785_v0 = vpop.f32.mrf.mxu0  ;;  %2115 = vtanh.f32 %v1094_v8 }
 0x1ac   : > { %v1075_v13 = vadd.f32 %v1849_v50, %v978_v60  ;;  %v1786_v56 = vadd.f32 %v1785_v0, %v1784_v47  ;;  %v2110_v21 = vpop.eup %2109 }
 0x1ad   : > { %v1165_v62 = vpack.c.bf16 %v1154_v28, %v1153_v51  ;;  %v1123_v1 = vmul.f32 0.5, %v2110_v21 }
 0x1ae   : > { %v1095_v20 = vmul.f32 0.5, %v1075_v13  ;;  %v981_v19 = vadd.f32 %v1786_v56, %v2903_v14 }
 0x1af   : > { %1875 = vmatprep.mubr.bf16.mxu1 %v1165_v62  ;;  %v1139_v26 = vadd.f32 0.5, %v1123_v1 }
 0x1b0   : > { %2117 = vtanh.f32 %v1095_v20  ;;  %v1078_v61 = vadd.f32 %v1850_v33, %v981_v19  ;;  %v2112_v29 = vpop.eup %2111 }
 0x1b1   : > { %v1124_v48 = vmul.f32 0.5, %v2112_v29  ;;  %v1155_v5 = vmul.f32 %v1139_v26, %v2936_v30 }
 0x1b2   : > { %v1096_v39 = vmul.f32 0.5, %v1078_v61 }
 0x1b3   : > { %v1140_v58 = vadd.f32 0.5, %v1124_v48 }
 0x1b4   : > { %2119 = vtanh.f32 %v1096_v39  ;;  %v2114_v63 = vpop.eup %2113 }
 0x1b5   : > { %v1125_v18 = vmul.f32 0.5, %v2114_v63  ;;  %v1156_v59 = vmul.f32 %v1140_v58, %v1062_v38  ;;  %v1187_v38 = vlaneseq }
 0x1b7   : > { %v1166_v52 = vpack.c.bf16 %v1156_v59, %v1155_v5  ;;  %v1141_v42 = vadd.f32 0.5, %v1125_v18  ;;  %v1188_v40 = vshrl.u32 %v1187_v38, 7 }
 0x1b8   : > { %v2116_v34 = vpop.eup %2115 }
 0x1b9   : > { %v1126_v54 = vmul.f32 0.5, %v2116_v34  ;;  %1876 = vmatmul.mubr.bf16.gmra.mxu1 %v1166_v52  ;;  %v1157_v9 = vmul.f32 %v1141_v42, %v1067_v11  ;;  %v1189_v22 = vsub.s32 0, %v1188_v40 }
 0x1bb   : > { %v1142_v14 = vadd.f32 0.5, %v1126_v54  ;;  %v1190_v45 = vrot.slane %v1186_v23, %v1189_v22 }
 0x1bd   : > { %v2118_v6 = vpop.eup %2117  ;;  %v1158_v36 = vmul.f32 %v1142_v14, %v1070_v24 }
 0x1be   : > { %v1127_v32 = vmul.f32 0.5, %v2118_v6 }
 0x1bf   : > { %v1167_v31 = vpack.c.bf16 %v1158_v36, %v1157_v9 }
 0x1c0   : > { %v1143_v4 = vadd.f32 0.5, %v1127_v32 }
 0x1c1   : > { %v2120_v16 = vpop.eup %2119  ;;  %1879 = vmatprep.mubr.bf16.mxu1 %v1167_v31 }
 0x1c2   : > { %v1128_v44 = vmul.f32 0.5, %v2120_v16  ;;  %v1159_v35 = vmul.f32 %v1143_v4, %v1075_v13 }
 0x1c4   : > { %v1144_v50 = vadd.f32 0.5, %v1128_v44 }
 0x1c6   : > { %v1160_v37 = vmul.f32 %v1144_v50, %v1078_v61 }
 0x1c8   : > { %v1168_v30 = vpack.c.bf16 %v1160_v37, %v1159_v35 }
 0x1ca   : > { %1880 = vmatmul.mubr.bf16.gmra.mxu1 %v1168_v30 }
 0x251   : > { %v1869_v25 = vpop.f32.mrf.mxu1 }
 0x252   : > { %v1282_v46 = vadd.f32 %v1869_v25, %v1190_v45 }
 0x253   : > { %v1273_v53 = vpop.f32.mrf.mxu1 }
 0x254   : > { %v1274_v17 = vadd.f32 %v1273_v53, %v1190_v45 }
 0x255   : > { %v1870_v15 = vpop.f32.mrf.mxu1 }
 0x256   : > { %v1285_v11 = vadd.f32 %v1870_v15, %v1190_v45 }
 0x257   : > { %v1276_v33 = vpop.f32.mrf.mxu1 }
 0x258   : > { %v1677_v2 = vpack.c.bf16 %v1285_v11, %v1282_v46  ;;  %v1277_v55 = vadd.f32 %v1276_v33, %v1190_v45 }
 0x25a   : > { %1716 = vst [vmem:[%s2954_s13 + $0x8] sm:$0xff] %v1677_v2   ;;  %v1672_v57 = vpack.c.bf16 %v1277_v55, %v1274_v17 }
 0x25c   : > { %1673 = vst [vmem:[%s2954_s13] sm:$0xff] %v1672_v57  }
 0x263   : > { %v1873_v27 = vpop.f32.mrf.mxu1 }
 0x264   : > { %v1298_v12 = vadd.f32 %v1873_v27, %v1190_v45 }
 0x265   : > { %v1289_v43 = vpop.f32.mrf.mxu1 }
 0x266   : > { %v1290_v24 = vadd.f32 %v1289_v43, %v1190_v45 }
 0x267   : > { %v1874_v7 = vpop.f32.mrf.mxu1 }
 0x268   : > { %v1301_v3 = vadd.f32 %v1874_v7, %v1190_v45 }
 0x269   : > { %v1292_v49 = vpop.f32.mrf.mxu1 }
 0x26a   : > { %v1687_v10 = vpack.c.bf16 %v1301_v3, %v1298_v12  ;;  %v1293_v47 = vadd.f32 %v1292_v49, %v1190_v45 }
 0x26c   : > { %1718 = vst [vmem:[%s2954_s13 + $0x18] sm:$0xff] %v1687_v10   ;;  %v1682_v60 = vpack.c.bf16 %v1293_v47, %v1290_v24 }
 0x26e   : > { %1717 = vst [vmem:[%s2954_s13 + $0x10] sm:$0xff] %v1682_v60  }
 0x279   : > { %v1877_v8 = vpop.f32.mrf.mxu1 }
 0x27a   : > { %v1314_v0 = vadd.f32 %v1877_v8, %v1190_v45 }
 0x27b   : > { %v1305_v51 = vpop.f32.mrf.mxu1 }
 0x27c   : > { %v1306_v21 = vadd.f32 %v1305_v51, %v1190_v45 }
 0x27d   : > { %v1878_v28 = vpop.f32.mrf.mxu1 }
 0x27e   : > { %v1317_v13 = vadd.f32 %v1878_v28, %v1190_v45 }
 0x27f   : > { %v1308_v56 = vpop.f32.mrf.mxu1 }
 0x280   : > { %v1697_v62 = vpack.c.bf16 %v1317_v13, %v1314_v0  ;;  %v1309_v20 = vadd.f32 %v1308_v56, %v1190_v45 }
 0x282   : > { %1720 = vst [vmem:[%s2954_s13 + $0x28] sm:$0xff] %v1697_v62   ;;  %v1692_v19 = vpack.c.bf16 %v1309_v20, %v1306_v21 }
 0x284   : > { %1719 = vst [vmem:[%s2954_s13 + $0x20] sm:$0xff] %v1692_v19  }
 0x28a   : > { %v1881_v1 = vpop.f32.mrf.mxu1 }
 0x28b   : > { %v1330_v39 = vadd.f32 %v1881_v1, %v1190_v45 }
 0x28c   : > { %v1321_v61 = vpop.f32.mrf.mxu1 }
 0x28d   : > { %v1322_v58 = vadd.f32 %v1321_v61, %v1190_v45 }
 0x28e   : > { %v1882_v29 = vpop.f32.mrf.mxu1 }
 0x28f   : > { %v1333_v48 = vadd.f32 %v1882_v29, %v1190_v45 }
 0x290   : > { %v1324_v26 = vpop.f32.mrf.mxu1 }
 0x291   : > { %v1707_v63 = vpack.c.bf16 %v1333_v48, %v1330_v39  ;;  %v1325_v18 = vadd.f32 %v1324_v26, %v1190_v45 }
 0x293   : > { %1722 = vst [vmem:[%s2954_s13 + $0x38] sm:$0xff] %v1707_v63   ;;  %v1702_v5 = vpack.c.bf16 %v1325_v18, %v1322_v58 }
 0x295   : > { %1721 = vst [vmem:[%s2954_s13 + $0x30] sm:$0xff] %v1702_v5  }
 0x296   : > { %2242 = shalt.err (!%p2239_p4)
}
 0x297   : > { %s2243_s0 = scalar_lea.hbm %s2969_s7, 1024  ;;  %s2247_s18 = scalar_lea.hbm %s3019_s6, 4096 }
 0x298   : > { %p2244_p3 = scmp.ne.s32.totalorder %s2969_s7, %s2243_s0  ;;  %p2248_p2 = scmp.lt.s32.totalorder %s2969_s7, %s3019_s6 }
 0x299   : > { %p2249_p6 = scmp.lt.s32.totalorder %s2247_s18, %s2243_s0 }
 0x29a   : > { %p2245_p7 = pnand %p2244_p3, %p3079_p0 }
 0x29b   : > { %p2250_p11 = por %p2249_p6, %p2248_p2 }
 0x29c   : > { %p2246_p8 = pneg %p2245_p7 }
 0x29e   : > { %p2251_p13 = pnand %p2250_p11, %p2246_p8 }
 0x2a0   : > { %2254 = shalt.err (!%p2251_p13)
}
 0x2a1   : > { %s2316_s8 = smov 64   ;;  %s2317_s17 = smov 4  }
 0x2a2   : > { %1895 = dma.vmem_to_hbm [thread:$0]  (%p3079_p0), %s2964_s2, 1024, %s2969_s7, %s1417_s20, %s2316_s8, %s2316_s8, %s2317_s17  }
 0x2a3 PF: > { %p1920_p5 = scmp.ge.s32.totalorder %s2305_s24, 2  ;;  %s1445_s13 = sand.u32 1, %s2293_s21  }
 0x2a4   : > { %p3080_p10 = scmp.ne.s32.totalorder %s3043_s28, 0  ;;  %s1446_s11 = scalar_lea.sflag [#allocation4], %s1445_s13 }
 0x2a6   : > { %p1912_p9 = pnand %p1920_p5, %p3080_p10 }
 0x2a8   : > { %p1913_p12 = pneg %p1912_p9 }
 0x2aa   : > { %2288 = dma.done.wait (%p1913_p12), %s1446_s11, 1024  }
 0x2ab   : > { %2290 = vsyncadd (%p1913_p12), %s1446_s11, 4294966272  ;;  %s3081_s14 = sld [smem:[#allocation16_spill]]  ;;  %p23_p1 = scmp.ge.s32.totalorder %s2430_s19, 6  }
 0x2ac   : > { %s3082_s21 = smov %s2297_s22  ;;  %s3083_s22 = smov %s2301_s23 }
 0x2ad   : > { %s3085_s24 = smov %s2430_s19  ;;  %25 = sbr.rel (!%p23_p1) target bundleno = 12 (0xc), region = 110 }
 0x2b1   : > { %s3084_s23 = smov %s3081_s14 }
 0x2b2   :  { %1451 = vsyncpa [#allocation3], 1 }
 0x2b3   :  { %1453 = vsyncpa [#allocation3 + $0x1], 1 }
 0x2b4   :  { %1454 = vsyncpa [#allocation6], 1 }
 0x2b5   :  { %1456 = vsyncpa [#allocation6 + $0x1], 1 }
 0x2b6   :  { %1457 = vsyncpa [#allocation9], 1 }
 0x2b7   :  { %1458 = vsyncpa [#allocation4], 1 }
 0x2b8   :  { %1460 = vsyncpa [#allocation4 + $0x1], 1 }

// kernel: tpu_custom_call.1
= control target key start
LH: loop header
LB: loop body
LE: loop exit
PB: predicated region body
PF: predicated region fallthrough
CT: control target
= control target key end

     0   :  { %s3013_s0 = inlined_call_operand.hbm [shape: bf16[512,128], index: 0, kind: input, shape index: {}]   ;;  %s3014_s1 = inlined_call_operand.hbm [shape: bf16[512,256], index: 1, kind: input, shape index: {}]   ;;  %s3015_s2 = inlined_call_operand.hbm [shape: bf16[384,128], index: 2, kind: input, shape index: {}]   ;;  %s3016_s3 = inlined_call_operand.vmem [shape: f32[1,128], index: 3, kind: input, shape index: {}]   ;;  %s3017_s4 = inlined_call_operand.hbm [shape: bf16[128,128], index: 4, kind: input, shape index: {}]   ;;  %s3018_s5 = inlined_call_operand.vmem [shape: bf16[1,128], index: 5, kind: input, shape index: {}]   ;;  %s3019_s6 = inlined_call_operand.hbm [shape: bf16[512,128], index: 6, kind: output, shape index: {}]  }
   0x1   :  { %3039 = sst [smem:[#allocation17_spill]] %s3013_s0 }
   0x2   :  { %3040 = sst [smem:[#allocation18_spill]] %s3015_s2 }
   0x3   :  { %3041 = sst [smem:[#allocation19_spill]] %s3017_s4 }
   0x4   :  { %11 = vsyncpa [#allocation3], 0 }
   0x5   :  { %13 = vsyncpa [#allocation3 + $0x1], 0 }
   0x6   :  { %14 = vsyncpa [#allocation6], 0 }
   0x7   :  { %16 = vsyncpa [#allocation6 + $0x1], 0 }
   0x8   :  { %17 = vsyncpa [#allocation9], 0 }
   0x9   :  { %18 = vsyncpa [#allocation4], 0 }
   0xa   :  { %20 = vsyncpa [#allocation4 + $0x1], 0  ;;  %s2353_s21 = smov 0   ;;  %s2355_s22 = smov 0  }
   0xb   :  { %s2357_s23 = smov 0   ;;  %s2359_s24 = smov 0  }
   0xc LB: > { %s2374_s25 = sadd.s32 4294967295, %s2305_s24   ;;  %s1545_s26 = sadd.s32 4294967294, %s2305_s24   ;;  %s2305_s24 = sphi %s2359_s24, %s3085_s24   ;;  %s2301_s23 = sphi %s2357_s23, %s3084_s23   ;;  %s2297_s22 = sphi %s2355_s22, %s3083_s22   ;;  %s2293_s21 = sphi %s2353_s21, %s3082_s21  }
   0xd   : > { %p46_p0 = scmp.ne.s32.totalorder %s2297_s22, %s2293_s21  ;;  %p3022_p1 = scmp.eq.s32.totalorder %s2374_s25, 0 }
   0xe   : > { %p180_p2 = scmp.eq.s32.totalorder %s2374_s25, 3  ;;  %p186_p3 = scmp.eq.s32.totalorder %s1545_s26, 3 }
   0xf   : > { %p2383_p4 = por %p3022_p1, %p46_p0  ;;  %p1546_p5 = scmp.ge.s32.totalorder %s2305_s24, 1 }
  0x10   : > { %p2388_p6 = por %p186_p3, %p46_p0  ;;  %p193_p7 = scmp.lt.s32.totalorder %s2305_s24, 5 }
  0x11   : > { %s3042_s27 = scalar_select %p2383_p4, 1, 0 }
  0x12   : > { %s3043_s28 = scalar_select %p2388_p6, 1, 0 }
  0x13   : > { %p2393_p8 = pnand %p1546_p5, %p193_p7  ;;  %s2307_s30 = smov [#allocation7]  }
  0x14   : > { %s205_s7 = sshll.u32 %s2307_s30, 4  ;;  %s2308_s9 = smov [#allocation8]   ;;  %s206_s7 = int_to_ptr.vmem [resolvable:$true] %s205_s7 }
  0x15   : > { %p1897_p9 = pneg %p2393_p8  ;;  %s221_s10 = sshll.u32 %s2308_s9, 4  ;;  %s222_s10 = int_to_ptr.vmem [resolvable:$true] %s221_s10 }
  0x16   : > { %s2132_s11 = scalar_lea.vmem %s206_s7, 3072  ;;  %p2140_p3 = scmp.lt.s32.totalorder %s206_s7, %s206_s7 }
  0x17   : > { %p2401_p10 = pnand %p1897_p9, %p3022_p1  ;;  %p2133_p12 = scmp.ne.s32.totalorder %s206_s7, %s2132_s11 }
  0x18   : > { %p2141_p5 = scmp.lt.s32.totalorder %s2132_s11, %s2132_s11 }
  0x19   : > { %p2123_p11 = pneg %p2401_p10 }
  0x1a   : > { %p2142_p7 = por %p2141_p5, %p2140_p3 }
  0x1b   : > { %p2135_p13 = pnand %p2133_p12, %p2123_p11 }
  0x1d   : > { %p2136_p0 = pneg %p2135_p13 }
  0x1f   : > { %p2143_p9 = pnand %p2142_p7, %p2136_p0 }
  0x21   : > { %2146 = shalt.err (!%p2143_p9)
}
  0x22   : > { %s3020_s12 = smov 64   ;;  %s3021_s13 = smov 4  }
  0x23   : > { %s3046_s2 = sld [smem:[#allocation18_spill]]  ;;  %s2158_s16 = scalar_lea.vmem %s222_s10, 1024 }
  0x24   : > { %p2159_p12 = scmp.ne.s32.totalorder %s222_s10, %s2158_s16  ;;  %p2166_p0 = scmp.lt.s32.totalorder %s222_s10, %s222_s10 }
  0x25   : > { %p2167_p5 = scmp.lt.s32.totalorder %s2158_s16, %s2158_s16 }
  0x26   : > { %p2161_p13 = pnand %p2159_p12, %p2123_p11 }
  0x27   : > { %p2168_p7 = por %p2167_p5, %p2166_p0 }
  0x28   : > { %p2162_p3 = pneg %p2161_p13 }
  0x29   : > { %1900 = dma.hbm_to_vmem [thread:$0]  (!%p2401_p10), %s3046_s2, 3072, %s206_s7, [#allocation6], %s3020_s12, %s3020_s12, %s3021_s13  }
  0x2a   : > { %p2169_p9 = pnand %p2168_p7, %p2162_p3 }
  0x2c   : > { %2172 = shalt.err (!%p2169_p9)
}
  0x2d   : > { %s3047_s4 = sld [smem:[#allocation19_spill]]  ;;  %s2430_s19 = sadd.s32 1, %s2305_s24  }
  0x2e   : > { %s33_s20 = sadd.s32 1, %s2301_s23  ;;  %s30_s26 = ssub.s32 %s2305_s24, %s2430_s19 }
  0x2f   : > { %p40_p11 = scmp.ne.s32.totalorder %s2301_s23, %s2297_s22  ;;  %p31_p12 = scmp.eq.s32.totalorder %s30_s26, 0 }
  0x30   : > { %p41_p13 = scmp.eq.s32.totalorder %s2305_s24, 0  ;;  %p1917_p0 = scmp.lt.s32.totalorder %s2305_s24, 4 }
  0x31   : > { %p2440_p3 = por %p180_p2, %p40_p11  ;;  %s2449_s8 = sand.u32 1, %s2301_s23  }
  0x32   : > { %s2446_s7 = scalar_select %p31_p12, %s2301_s23, %s33_s20  }
  0x33   : > { %1903 = dma.hbm_to_vmem [thread:$0]  (!%p2401_p10), %s3047_s4, 1024, %s222_s10, [#allocation9], %s3020_s12, %s3020_s12, %s3021_s13  }
  0x34   : > { %s3048_s30 = scalar_select %p2440_p3, 1, 0 }
  0x35   : > { %3049 = sst [smem:[#allocation16_spill]] %s2446_s7  ;;  %p42_p5 = por %p41_p13, %p40_p11 }
  0x36   : > { %s1550_s9 = sshll.u32 %s2449_s8, 6  ;;  %s1617_s10 = sshll.u32 %s2305_s24, 10 }
  0x37   : > { %s3050_s0 = sld [smem:[#allocation17_spill]]  ;;  %s242_s16 = scalar_lea.vmem [#allocation2], %s1550_s9 }
  0x38   : > { %s249_s17 = sshll.u32 %s242_s16, 4  ;;  %p2460_p2 = pnand %p1917_p0, %p42_p5  ;;  %s2458_s17 = int_to_ptr.vmem [resolvable:$true] %s249_s17 }
  0x39   : > { %s239_s12 = scalar_lea.sflag [#allocation3], %s2449_s8 }
  0x3a   : > { %p2175_p7 = pneg %p2460_p2 }
  0x3d   : > { %s2456_s15 = scalar_lea.hbm %s3050_s0, %s1617_s10  ;;  %s2178_s11 = scalar_lea.hbm %s3050_s0, 4096 }
  0x3e   : > { %s2173_s13 = scalar_lea.hbm %s2456_s15, 1024  ;;  %p2179_p12 = scmp.lt.s32.totalorder %s2456_s15, %s3050_s0 }
  0x3f   : > { %p2174_p10 = scmp.ne.s32.totalorder %s2456_s15, %s2173_s13  ;;  %p2180_p13 = scmp.lt.s32.totalorder %s2178_s11, %s2173_s13 }
  0x41   : > { %p2176_p9 = pnand %p2175_p7, %p2174_p10  ;;  %p2181_p0 = por %p2180_p13, %p2179_p12 }
  0x43   : > { %p2177_p11 = pneg %p2176_p9 }
  0x45   : > { %p2182_p5 = pnand %p2181_p0, %p2177_p11 }
  0x47   : > { %2185 = shalt.err (!%p2182_p5)
}
  0x48   : > { %s2186_s20 = scalar_lea.vmem %s2458_s17, 1024  ;;  %s2311_s9 = smov [#allocation2]  }
  0x49   : > { %p2187_p1 = scmp.ne.s32.totalorder %s2458_s17, %s2186_s20  ;;  %s2191_s10 = sshll.u32 %s2311_s9, 4  ;;  %s2192_s10 = int_to_ptr.vmem [resolvable:$false] %s2191_s10 }
  0x4a   : > { %s2193_s26 = scalar_lea.vmem %s2192_s10, 2048  ;;  %p2194_p6 = scmp.lt.s32.totalorder %s2458_s17, %s2192_s10 }
  0x4b   : > { %p2189_p10 = pnand %p2187_p1, %p2175_p7  ;;  %p2195_p3 = scmp.lt.s32.totalorder %s2193_s26, %s2186_s20 }
  0x4d   : > { %p2190_p9 = pneg %p2189_p10  ;;  %p2196_p4 = por %p2195_p3, %p2194_p6 }
  0x4f   : > { %p2197_p12 = pnand %p2196_p4, %p2190_p9 }
  0x51   : > { %2200 = shalt.err (!%p2197_p12)
}
  0x52   : > { %s3052_s13 = smov 4   ;;  %s3053_s11 = smov 64  }
  0x53   : > { %1907 = dma.hbm_to_vmem [thread:$0]  (!%p2460_p2), %s2456_s15, 1024, %s2458_s17, %s239_s12, %s3053_s11, %s3053_s11, %s3052_s13  }
  0x54   : > { %s1619_s14 = sshll.u32 %s2305_s24, 11  ;;  %s3054_s9 = sshll.u32 %s2449_s8, 7 }
  0x55   : > { %s2500_s26 = scalar_lea.hbm %s3014_s1, %s1619_s14  ;;  %s263_s10 = scalar_lea.vmem [#allocation5], %s3054_s9 }
  0x56   : > { %s271_s0 = sshll.u32 %s263_s10, 4  ;;  %s3055_s2 = sand.u32 1, %s2305_s24   ;;  %s2504_s0 = int_to_ptr.vmem [resolvable:$true] %s271_s0 }
  0x57   : > { %s2508_s4 = scalar_lea.sflag [#allocation6], %s3055_s2  ;;  %s2201_s7 = scalar_lea.hbm %s2500_s26, 2048 }
  0x58   : > { %p2202_p1 = scmp.ne.s32.totalorder %s2500_s26, %s2201_s7  ;;  %s2206_s8 = scalar_lea.hbm %s3014_s1, 8192 }
  0x59   : > { %p2207_p3 = scmp.lt.s32.totalorder %s2500_s26, %s3014_s1  ;;  %p2208_p11 = scmp.lt.s32.totalorder %s2206_s8, %s2201_s7 }
  0x5a   : > { %p2204_p4 = pnand %p2202_p1, %p2175_p7 }
  0x5b   : > { %p2209_p13 = por %p2208_p11, %p2207_p3 }
  0x5c   : > { %p2205_p6 = pneg %p2204_p4 }
  0x5e   : > { %p2210_p0 = pnand %p2209_p13, %p2205_p6 }
  0x60   : > { %2213 = shalt.err (!%p2210_p0)
}
  0x61   : > { %s2214_s2 = scalar_lea.vmem %s2504_s0, 2048  ;;  %s2312_s11 = smov [#allocation5]  }
  0x62   : > { %p2215_p5 = scmp.ne.s32.totalorder %s2504_s0, %s2214_s2  ;;  %s2219_s14 = sshll.u32 %s2312_s11, 4  ;;  %s2220_s14 = int_to_ptr.vmem [resolvable:$false] %s2219_s14 }
  0x63   : > { %s2221_s16 = scalar_lea.vmem %s2220_s14, 4096  ;;  %p2222_p12 = scmp.lt.s32.totalorder %s2504_s0, %s2220_s14 }
  0x64   : > { %p2217_p10 = pnand %p2215_p5, %p2175_p7  ;;  %p2223_p1 = scmp.lt.s32.totalorder %s2221_s16, %s2214_s2 }
  0x66   : > { %p2218_p9 = pneg %p2217_p10  ;;  %p2224_p4 = por %p2223_p1, %p2222_p12 }
  0x68   : > { %p2225_p3 = pnand %p2224_p4, %p2218_p9 }
  0x6a   : > { %2228 = shalt.err (!%p2225_p3)
}
  0x6b   : > { %s2313_s7 = smov 128   ;;  %s2314_s20 = smov 8  }
  0x6c   : > { %1910 = dma.hbm_to_vmem [thread:$0]  (!%p2460_p2), %s2500_s26, 2048, %s2504_s0, %s2508_s4, %s2313_s7, %s2313_s7, %s2314_s20  }
  0x6d   : > { %283 = sbr.rel (%p2393_p8) target bundleno = 675 (0x2a3), region = 44  ;;  %s2536_s9 = sand.u32 (!%p2393_p8), 1, %s2297_s22  }
  0x6e   : > { %s1558_s10 = sshll.u32 (!%p2393_p8), %s2536_s9, 6  ;;  %s286_s12 = scalar_lea.sflag (!%p2393_p8), [#allocation3], %s2536_s9 }
  0x6f   : > { %s2542_s15 = scalar_lea.vmem (!%p2393_p8), [#allocation2], %s1558_s10  ;;  %p3056_p7 = scmp.ne.s32.totalorder (!%p2393_p8), %s3042_s27, 0 }
  0x72   : > { %2272 = dma.done.wait (%p3056_p7), %s286_s12, 1024  }
  0x73   : > { %2274 = vsyncadd (%p3056_p7), %s286_s12, 4294966272  ;;  %s294_s0 = sand.u32 1, %s2374_s25   ;;  %s1559_s4 = sshll.u32 %s2536_s9, 7 }
  0x74   : > { %s295_s29 = scalar_lea.sflag [#allocation6], %s294_s0  ;;  %s2550_s18 = scalar_lea.vmem [#allocation5], %s1559_s4 }
  0x75   : > { %2276 = dma.done.wait (%p3056_p7), %s295_s29, 2048  }
  0x76   : > { %2278 = vsyncadd (%p3056_p7), %s295_s29, 4294965248  ;;  %p3057_p8 = scmp.eq.s32.totalorder %s2374_s25, 0 }
  0x78   : > { %2280 = dma.done.wait (%p3057_p8), [#allocation6], 3072   ;;  %p3058_p2 = pmov %p3057_p8 }
  0x7a   : > { %2282 = vsyncadd (%p3058_p2), [#allocation6], 4294964224  ;;  %p3059_p6 = pmov %p3058_p2 }
  0x7b   : > { %p3060_p11 = pmov %p3058_p2 }
  0x7c   : > { %2284 = dma.done.wait (%p3059_p6), [#allocation9], 1024  }
  0x7d   : > { %2286 = vsyncadd (%p3060_p11), [#allocation9], 4294966272  ;;  %v1961_v0 = vld [vmem:[#allocation7 + $0x78] sm:$0xff]   ;;  %v1963_v2 = vld [vmem:[#allocation7 + $0x70] sm:$0xff]   ;;  %s2954_s13 = scalar_lea.vmem [#allocation10], %s1558_s10  ;;  %s1636_s11 = sshll.u32 %s2374_s25, 10 }
  0x7e   : > { %v1962_v1 = vld [vmem:[#allocation7 + $0x38] sm:$0xff]   ;;  %1723 = vmatprep.subr.bf16.mxu0 %v1961_v0  ;;  %v1965_v4 = vld [vmem:[#allocation7 + $0x30] sm:$0xff]   ;;  %v1966_v5 = vld [vmem:[#allocation7 + $0x68] sm:$0xff]   ;;  %s1430_s2 = sshll.u32 %s2954_s13, 4  ;;  %s2969_s7 = scalar_lea.hbm %s3019_s6, %s1636_s11  ;;  %s2964_s2 = int_to_ptr.vmem [resolvable:$true] %s1430_s2 }
  0x7f   : > { %1724 = vmatpush3.bf16.msra.mxu0 %v1962_v1  ;;  %v1964_v3 = vld [vmem:[#allocation7 + $0xb8] sm:$0xff]   ;;  %v1967_v6 = vld [vmem:[#allocation7 + $0xb0] sm:$0xff]   ;;  %v1968_v7 = vld [vmem:[#allocation7 + $0x28] sm:$0xff]   ;;  %s1417_s20 = scalar_lea.sflag [#allocation4], %s2536_s9  ;;  %s2229_s10 = scalar_lea.vmem %s2964_s2, 1024 }
  0x80   : > { %1725 = vmatprep.subr.bf16.mxu0 %v1963_v2  ;;  %1819 = vmatprep.subr.bf16.mxu1 %v1964_v3  ;;  %v1969_v8 = vld [vmem:[#allocation7 + $0x60] sm:$0xff]   ;;  %v1970_v9 = vld [vmem:[#allocation7 + $0xa8] sm:$0xff]   ;;  %v1972_v11 = vld [vmem:[#allocation7 + $0x58] sm:$0xff]   ;;  %p2230_p13 = scmp.ne.s32.totalorder %s2964_s2, %s2229_s10  ;;  %p3079_p0 = scmp.ne.s32.totalorder %s3048_s30, 0 }
  0x81   : > { %1820 = vmatpush3.bf16.msra.mxu1 %v1964_v3  ;;  %v1971_v10 = vld [vmem:[#allocation7 + $0x20] sm:$0xff]   ;;  %v1974_v13 = vld [vmem:[#allocation7 + $0x18] sm:$0xff]   ;;  %v1975_v15 = vld [vmem:[#allocation7 + $0x50] sm:$0xff]   ;;  %s2315_s25 = smov [#allocation10]  }
  0x82   : > { %1821 = vmatprep.subr.bf16.mxu1 %v1967_v6  ;;  %v1973_v12 = vld [vmem:[#allocation7 + $0xa0] sm:$0xff]   ;;  %v1976_v14 = vld [vmem:[#allocation7 + $0x98] sm:$0xff]   ;;  %v1977_v16 = vld [vmem:[#allocation7 + $0x10] sm:$0xff]   ;;  %p2231_p5 = pnand %p2230_p13, %p3079_p0  ;;  %s2233_s12 = sshll.u32 %s2315_s25, 4  ;;  %s2234_s12 = int_to_ptr.vmem [resolvable:$false] %s2233_s12 }
  0x83   : > { %1726 = vmatpush3.bf16.msra.mxu0 %v1965_v4  ;;  %v1979_v17 = vld [vmem:[#allocation7 + $0x90] sm:$0xff]   ;;  %v1978_v18 = vld [vmem:[#allocation7 + $0x48] sm:$0xff]   ;;  %v2565_v21 = vld [vmem:[%s2550_s18] sm:$0xff]  ;;  %p2236_p9 = scmp.lt.s32.totalorder %s2964_s2, %s2234_s12 }
  0x84   : > { %1727 = vmatprep.subr.bf16.mxu0 %v1966_v5  ;;  %v1980_v19 = vld [vmem:[#allocation7 + $0x8] sm:$0xff]   ;;  %v2571_v23 = vld [vmem:[%s2542_s15] sm:$0xff]   ;;  %v472_v25 = vunpack.c.l.bf16 %v2565_v21  ;;  %v473_v29 = vunpack.c.h.bf16 %v2565_v21  ;;  %v2580_v31 = vld [vmem:[%s2550_s18 + $0x10] sm:$0xff]  ;;  %p2232_p10 = pneg %p2231_p5 }
  0x85   : > { %1822 = vmatpush3.bf16.msra.mxu1 %v1967_v6  ;;  %v1982_v20 = vld [vmem:[#allocation7 + $0x88] sm:$0xff]   ;;  %v1981_v24 = vld [vmem:[#allocation7 + $0x40] sm:$0xff]   ;;  %v1639_v27 = vunpack.c.l.bf16 %v2571_v23  ;;  %v1640_v28 = vunpack.c.h.bf16 %v2571_v23  ;;  %v2583_v32 = vld [vmem:[%s2550_s18 + $0x18] sm:$0xff]  ;;  %v477_v42 = vunpack.c.h.bf16 %v2580_v31  ;;  %v476_v44 = vunpack.c.l.bf16 %v2580_v31 }
  0x86   : > { %1823 = vmatprep.subr.bf16.mxu1 %v1970_v9  ;;  %v2568_v22 = vld [vmem:[%s2550_s18 + $0x8] sm:$0xff]  ;;  %v504_v34 = vmul.f32 0.5, %v472_v25  ;;  %v1983_v38 = vld [vmem:[#allocation7] sm:$0xff]   ;;  %v505_v40 = vmul.f32 0.5, %v473_v29  ;;  %v479_v43 = vunpack.c.h.bf16 %v2583_v32  ;;  %v478_v45 = vunpack.c.l.bf16 %v2583_v32  ;;  %v2617_v52 = vld [vmem:[%s2542_s15 + $0x10] sm:$0xff]  }
  0x87   : > { %1728 = vmatpush3.bf16.msra.mxu0 %v1968_v7  ;;  %v474_v26 = vunpack.c.l.bf16 %v2568_v22  ;;  %v475_v30 = vunpack.c.h.bf16 %v2568_v22  ;;  %v2586_v33 = vld [vmem:[%s2542_s15 + $0x8] sm:$0xff]   ;;  %v376_v36 = vmul.f32 0.5, %v1639_v27  ;;  %v377_v37 = vmul.f32 0.5, %v1640_v28  ;;  %v1984_v39 = vld [vmem:[#allocation7 + $0x80] sm:$0xff]   ;;  %v2630_v59 = vld [vmem:[%s2550_s18 + $0x30] sm:$0xff] }
  0x88   : > { %1729 = vmatprep.subr.bf16.mxu0 %v1969_v8  ;;  %1993 = vtanh.f32 %v504_v34  ;;  %v1643_v46 = vunpack.c.l.bf16 %v2586_v33  ;;  %v2606_v47 = vld [vmem:[%s2550_s18 + $0x20] sm:$0xff]  ;;  %v2609_v48 = vld [vmem:[%s2550_s18 + $0x28] sm:$0xff]  ;;  %v509_v49 = vmul.f32 0.5, %v477_v42  ;;  %v511_v50 = vmul.f32 0.5, %v479_v43  ;;  %v2633_v60 = vld [vmem:[%s2550_s18 + $0x38] sm:$0xff] }
  0x89   : > { %1824 = vmatpush3.bf16.msra.mxu1 %v1970_v9  ;;  %v506_v35 = vmul.f32 0.5, %v474_v26  ;;  %v507_v41 = vmul.f32 0.5, %v475_v30  ;;  %v1644_v51 = vunpack.c.h.bf16 %v2586_v33  ;;  %v508_v53 = vmul.f32 0.5, %v476_v44  ;;  %v2639_v0 = vld [vmem:[%s2542_s15 + $0x18] sm:$0xff]   ;;  %v2653_v7 = vld [vmem:[%s2550_s18 + $0x40] sm:$0xff]  ;;  %v2656_v8 = vld [vmem:[%s2550_s18 + $0x48] sm:$0xff] }
  0x8a   : > { %1825 = vmatprep.subr.bf16.mxu1 %v1973_v12  ;;  %v510_v54 = vmul.f32 0.5, %v478_v45  ;;  %v378_v55 = vmul.f32 0.5, %v1643_v46  ;;  %v480_v57 = vunpack.c.l.bf16 %v2606_v47  ;;  %v482_v58 = vunpack.c.l.bf16 %v2609_v48 }
  0x8b   : > { %1730 = vmatpush3.bf16.msra.mxu0 %v1971_v10  ;;  %1995 = vtanh.f32 %v506_v35  ;;  %v379_v56 = vmul.f32 0.5, %v1644_v51  ;;  %v1647_v61 = vunpack.c.l.bf16 %v2617_v52  ;;  %v1648_v62 = vunpack.c.h.bf16 %v2617_v52 }
  0x8c   : > { %1731 = vmatprep.subr.bf16.mxu0 %v1972_v11  ;;  %1997 = vtanh.f32 %v376_v36  ;;  %v3038_v63 = vunpack.c.h.bf16 %v2606_v47  ;;  %v512_v1 = vmul.f32 0.5, %v480_v57  ;;  %v514_v2 = vmul.f32 0.5, %v482_v58 }
  0x8d   : > { %1826 = vmatpush3.bf16.msra.mxu1 %v1973_v12  ;;  %1999 = vtanh.f32 %v377_v37  ;;  %v3036_v3 = vunpack.c.h.bf16 %v2609_v48  ;;  %v380_v4 = vmul.f32 0.5, %v1647_v61  ;;  %v381_v5 = vmul.f32 0.5, %v1648_v62  ;;  %v2663_v12 = vld [vmem:[%s2542_s15 + $0x20] sm:$0xff]  }
  0x8e   : > { %1827 = vmatprep.subr.bf16.mxu1 %v1976_v14  ;;  %2001 = vtanh.f32 %v505_v40  ;;  %v513_v6 = vmul.f32 0.5, %v3038_v63  ;;  %v3035_v10 = vunpack.c.h.bf16 %v2630_v59  ;;  %v3033_v11 = vunpack.c.h.bf16 %v2633_v60 }
  0x8f   : > { %1732 = vmatpush3.bf16.msra.mxu0 %v1974_v13  ;;  %2003 = vtanh.f32 %v507_v41  ;;  %v515_v9 = vmul.f32 0.5, %v3036_v3  ;;  %v3032_v13 = vunpack.c.l.bf16 %v2630_v59  ;;  %v3025_v35 = vunpack.c.l.bf16 %v2653_v7 }
  0x90   : > { %1733 = vmatprep.subr.bf16.mxu0 %v1975_v15  ;;  %2005 = vtanh.f32 %v509_v49  ;;  %v3029_v15 = vunpack.c.l.bf16 %v2639_v0  ;;  %v3026_v36 = vunpack.c.l.bf16 %v2656_v8  ;;  %v3028_v37 = vunpack.c.l.bf16 %v2663_v12 }
  0x91   : > { %1828 = vmatpush3.bf16.msra.mxu1 %v1976_v14  ;;  %2007 = vtanh.f32 %v511_v50  ;;  %v3031_v14 = vunpack.c.l.bf16 %v2633_v60  ;;  %v2692_v41 = vmul.f32 0.5, %v3025_v35  ;;  %v3037_v50 = vunpack.c.h.bf16 %v2656_v8 }
  0x92   : > { %1829 = vmatprep.subr.bf16.mxu1 %v1979_v17  ;;  %2009 = vtanh.f32 %v508_v53  ;;  %v2696_v49 = vmul.f32 0.5, %v3026_v36  ;;  %v2700_v53 = vld [vmem:[%s2550_s18 + $0x50] sm:$0xff]  ;;  %v3063_v52 = vunpack.c.h.bf16 %v2630_v59 }
  0x93   : > { %1734 = vmatpush3.bf16.msra.mxu0 %v1977_v16  ;;  %2011 = vtanh.f32 %v510_v54  ;;  %v517_v16 = vmul.f32 0.5, %v3035_v10 }
  0x94   : > { %1735 = vmatprep.subr.bf16.mxu0 %v1978_v18  ;;  %v3027_v18 = vunpack.c.h.bf16 %v2639_v0  ;;  %2013 = vtanh.f32 %v378_v55 }
  0x95   : > { %1830 = vmatpush3.bf16.msra.mxu1 %v1979_v17  ;;  %v519_v17 = vmul.f32 0.5, %v3033_v11  ;;  %2015 = vtanh.f32 %v379_v56  ;;  %v1994_v40 = vpop.eup %1993  ;;  %v2704_v56 = vmul.f32 0.5, %v3028_v37 }
  0x96   : > { %1831 = vmatprep.subr.bf16.mxu1 %v1982_v20  ;;  %v2683_v34 = vmul.f32 0.5, %v3027_v18  ;;  %2017 = vtanh.f32 %v512_v1  ;;  %v568_v55 = vmul.f32 0.5, %v1994_v40 }
  0x97   : > { %1736 = vmatpush3.bf16.msra.mxu0 %v1980_v19  ;;  %v516_v19 = vmul.f32 0.5, %v3032_v13  ;;  %2019 = vtanh.f32 %v514_v2  ;;  %v2711_v2 = vld [vmem:[%s2550_s18 + $0x58] sm:$0xff] }
  0x98   : > { %1737 = vmatprep.subr.bf16.mxu0 %v1981_v24  ;;  %v2679_v24 = vmul.f32 0.5, %v3029_v15  ;;  %v1996_v54 = vpop.eup %1995  ;;  %2021 = vtanh.f32 %v380_v4  ;;  %v2719_v4 = vmul.f32 0.5, %v3037_v50  ;;  %v600_v37 = vadd.f32 0.5, %v568_v55 }
  0x99   : > { %1832 = vmatpush3.bf16.msra.mxu1 %v1982_v20  ;;  %v518_v20 = vmul.f32 0.5, %v3031_v14  ;;  %v1998_v35 = vpop.eup %1997  ;;  %v570_v36 = vmul.f32 0.5, %v1996_v54  ;;  %2023 = vtanh.f32 %v381_v5 }
  0x9a   : > { %1833 = vmatprep.subr.bf16.mxu1 %v1984_v39  ;;  %v2000_v40 = vpop.eup %1999  ;;  %v408_v15 = vmul.f32 0.5, %v1998_v35  ;;  %2025 = vtanh.f32 %v513_v6 }
  0x9b   : > { %1738 = vmatpush3.bf16.msra.mxu0 %v1983_v38  ;;  %v3030_v38 = vunpack.c.h.bf16 %v2663_v12  ;;  %v2002_v14 = vpop.eup %2001  ;;  %v602_v13 = vadd.f32 0.5, %v570_v36  ;;  %v409_v11 = vmul.f32 0.5, %v2000_v40  ;;  %2027 = vtanh.f32 %v515_v9 }
  0x9c   : > { %v2004_v54 = vpop.eup %2003  ;;  %v424_v10 = vadd.f32 0.5, %v408_v15  ;;  %v569_v3 = vmul.f32 0.5, %v2002_v14  ;;  %2029 = vtanh.f32 %v517_v16 }
  0x9d   : > { %1834 = vmatpush3.bf16.msra.mxu1 %v1984_v39  ;;  %v3034_v39 = vunpack.c.h.bf16 %v2653_v7  ;;  %v2708_v1 = vmul.f32 0.5, %v3030_v38  ;;  %v2006_v50 = vpop.eup %2005  ;;  %v634_v35 = vmul.f32 %v602_v13, %v474_v26  ;;  %v425_v6 = vadd.f32 0.5, %v409_v11 }
  0x9e   : > { %v571_v55 = vmul.f32 0.5, %v2004_v54  ;;  %2031 = vtanh.f32 %v519_v17  ;;  %v2008_v38 = vpop.eup %2007  ;;  %v440_v9 = vmul.f32 %v1639_v27, %v424_v10  ;;  %v601_v36 = vadd.f32 0.5, %v569_v3 }
  0x9f   : > { %v2715_v18 = vmul.f32 0.5, %v3034_v39  ;;  %v632_v39 = vmul.f32 %v600_v37, %v472_v25  ;;  %v573_v40 = vmul.f32 0.5, %v2006_v50  ;;  %2033 = vtanh.f32 %v516_v19  ;;  %v2010_v5 = vpop.eup %2009 }
  0xa0   : > { %v441_v25 = vmul.f32 %v1640_v28, %v425_v6  ;;  %v603_v14 = vadd.f32 0.5, %v571_v55  ;;  %v575_v15 = vmul.f32 0.5, %v2008_v38  ;;  %v2012_v16 = vpop.eup %2011  ;;  %v633_v26 = vmul.f32 %v601_v36, %v473_v29 }
  0xa1   : > { %v665_v63 = vpack.c.bf16 %v634_v35, %v632_v39  ;;  %v605_v11 = vadd.f32 0.5, %v573_v40  ;;  %v572_v13 = vmul.f32 0.5, %v2010_v5  ;;  %2035 = vtanh.f32 %v518_v20  ;;  %v2014_v17 = vpop.eup %2013 }
  0xa2   : > { %v664_v27 = vpack.c.bf16 %v441_v25, %v440_v9  ;;  %v635_v3 = vmul.f32 %v603_v14, %v475_v30  ;;  %v607_v10 = vadd.f32 0.5, %v575_v15  ;;  %v574_v19 = vmul.f32 0.5, %v2012_v16  ;;  %v2016_v37 = vpop.eup %2015 }
  0xa3   : > { %919 = vmatprep.mubr.bf16.mxu0 %v665_v63  ;;  %v637_v23 = vmul.f32 %v605_v11, %v477_v42  ;;  %v604_v28 = vadd.f32 0.5, %v572_v13  ;;  %v410_v38 = vmul.f32 0.5, %v2014_v17  ;;  %2037 = vtanh.f32 %v2679_v24  ;;  %v2018_v21 = vpop.eup %2017 }
  0xa4   : > { %920 = vmatmul.mubr.bf16.vlgmr.msra.gmra.mxu0 %v664_v27  ;;  %v666_v29 = vpack.c.bf16 %v635_v3, %v633_v26  ;;  %v639_v63 = vmul.f32 %v607_v10, %v479_v43  ;;  %v606_v20 = vadd.f32 0.5, %v574_v19  ;;  %v411_v39 = vmul.f32 0.5, %v2016_v37  ;;  %v2020_v22 = vpop.eup %2019 }
  0xa5   : > { %v636_v30 = vmul.f32 %v604_v28, %v476_v44  ;;  %v426_v50 = vadd.f32 0.5, %v410_v38  ;;  %v576_v5 = vmul.f32 0.5, %v2018_v21  ;;  %2039 = vtanh.f32 %v2683_v34  ;;  %v2022_v42 = vpop.eup %2021 }
  0xa6   : > { %1835 = vmatprep.mubr.bf16.mxu1 %v666_v29  ;;  %v669_v54 = vpack.c.bf16 %v639_v63, %v637_v23  ;;  %v638_v24 = vmul.f32 %v606_v20, %v478_v45  ;;  %v427_v35 = vadd.f32 0.5, %v411_v39  ;;  %v578_v6 = vmul.f32 0.5, %v2020_v22  ;;  %v2024_v55 = vpop.eup %2023 }
  0xa7   : > { %v442_v43 = vmul.f32 %v1643_v46, %v426_v50  ;;  %v608_v9 = vadd.f32 0.5, %v576_v5  ;;  %v412_v36 = vmul.f32 0.5, %v2022_v42  ;;  %2041 = vtanh.f32 %v2692_v41  ;;  %v2026_v31 = vpop.eup %2025 }
  0xa8   : > { %1836 = vmatmul.mubr.bf16.vlgmr.msra.gmra.mxu1 %v669_v54  ;;  %v668_v44 = vpack.c.bf16 %v638_v24, %v636_v30  ;;  %v443_v34 = vmul.f32 %v1644_v51, %v427_v35  ;;  %v610_v40 = vadd.f32 0.5, %v578_v6  ;;  %v413_v25 = vmul.f32 0.5, %v2024_v55  ;;  %v2028_v32 = vpop.eup %2027 }
  0xa9   : > { %v640_v45 = vmul.f32 %v608_v9, %v480_v57  ;;  %v428_v14 = vadd.f32 0.5, %v412_v36  ;;  %v577_v15 = vmul.f32 0.5, %v2026_v31  ;;  %2043 = vtanh.f32 %v2696_v49  ;;  %v2030_v46 = vpop.eup %2029 }
  0xaa   : > { %927 = vmatprep.mubr.bf16.mxu0 %v668_v44  ;;  %v667_v16 = vpack.c.bf16 %v443_v34, %v442_v43  ;;  %v642_v41 = vmul.f32 %v610_v40, %v482_v58  ;;  %v429_v26 = vadd.f32 0.5, %v413_v25  ;;  %v579_v11 = vmul.f32 0.5, %v2028_v32  ;;  %v2789_v34 = vld [vmem:[%s2550_s18 + $0x68] sm:$0xff] }
  0xab   : > { %v2032_v33 = vpop.eup %2031  ;;  %v444_v51 = vmul.f32 %v1647_v61, %v428_v14  ;;  %v609_v13 = vadd.f32 0.5, %v577_v15  ;;  %v581_v17 = vmul.f32 0.5, %v2030_v46  ;;  %2045 = vtanh.f32 %v2704_v56 }
  0xac   : > { %v2034_v57 = vpop.eup %2033  ;;  %928 = vmatmul.mubr.bf16.gmra.mxu0 %v667_v16  ;;  %v671_v27 = vpack.c.bf16 %v642_v41, %v640_v45  ;;  %v445_v49 = vmul.f32 %v1648_v62, %v429_v26  ;;  %v611_v3 = vadd.f32 0.5, %v579_v11  ;;  %v583_v10 = vmul.f32 0.5, %v2032_v33  ;;  %v2801_v26 = vld [vmem:[%s2542_s15 + $0x30] sm:$0xff]  }
  0xad   : > { %v3061_v58 = vunpack.c.h.bf16 %v2606_v47  ;;  %v613_v37 = vadd.f32 0.5, %v581_v17  ;;  %v580_v23 = vmul.f32 0.5, %v2034_v57  ;;  %2047 = vtanh.f32 %v2708_v1  ;;  %v2770_v47 = vld [vmem:[%s2542_s15 + $0x28] sm:$0xff]  }
  0xae   : > { %v2036_v61 = vpop.eup %2035  ;;  %935 = vmatprep.mubr.bf16.mxu0 %v671_v27  ;;  %v670_v28 = vpack.c.bf16 %v445_v49, %v444_v51  ;;  %v3062_v56 = vunpack.c.h.bf16 %v2609_v48  ;;  %v615_v21 = vadd.f32 0.5, %v583_v10  ;;  %2049 = vtanh.f32 %v2715_v18 }
  0xaf   : > { %v641_v19 = vmul.f32 %v609_v13, %v3061_v58  ;;  %v645_v62 = vmul.f32 %v613_v37, %v3063_v52  ;;  %v582_v29 = vmul.f32 0.5, %v2036_v61  ;;  %v612_v63 = vadd.f32 0.5, %v580_v23 }
  0xb0   : > { %v643_v38 = vmul.f32 %v611_v3, %v3062_v56  ;;  %2051 = vtanh.f32 %v2719_v4  ;;  %v2038_v20 = vpop.eup %2037  ;;  %v3064_v39 = vunpack.c.h.bf16 %v2633_v60  ;;  %v3065_v48 = vunpack.c.h.bf16 %v2700_v53 }
  0xb1   : > { %v3066_v50 = vunpack.c.h.bf16 %v2711_v2  ;;  %v614_v5 = vadd.f32 0.5, %v582_v29  ;;  %v3067_v42 = vunpack.c.l.bf16 %v2630_v59  ;;  %v414_v4 = vmul.f32 0.5, %v2038_v20  ;;  %v2786_v59 = vld [vmem:[%s2550_s18 + $0x60] sm:$0xff] }
  0xb2   : > { %v672_v1 = vpack.c.bf16 %v643_v38, %v641_v19  ;;  %v647_v22 = vmul.f32 %v615_v21, %v3064_v39  ;;  %v525_v30 = vmul.f32 0.5, %v3065_v48  ;;  %v492_v24 = vunpack.c.l.bf16 %v2700_v53  ;;  %v2040_v35 = vpop.eup %2039 }
  0xb3   : > { %v527_v18 = vmul.f32 0.5, %v3066_v50  ;;  %v644_v54 = vmul.f32 %v612_v63, %v3067_v42  ;;  %v494_v55 = vunpack.c.l.bf16 %v2711_v2  ;;  %v1659_v43 = vunpack.c.l.bf16 %v2770_v47  ;;  %v2826_v50 = vld [vmem:[%s2550_s18 + $0x70] sm:$0xff] }
  0xb4   : > { %1839 = vmatprep.mubr.bf16.mxu1 %v672_v1  ;;  %v675_v6 = vpack.c.bf16 %v647_v22, %v645_v62  ;;  %2053 = vtanh.f32 %v525_v30  ;;  %v3068_v9 = vunpack.c.l.bf16 %v2633_v60  ;;  %v415_v31 = vmul.f32 0.5, %v2040_v35  ;;  %v2042_v40 = vpop.eup %2041  ;;  %936 = vmatmul.mubr.bf16.gmra.mxu0 %v670_v28  ;;  %v2831_v35 = vld [vmem:[%s2550_s18 + $0x78] sm:$0xff] }
  0xb5   : > { %v430_v44 = vadd.f32 0.5, %v414_v4  ;;  %2055 = vtanh.f32 %v527_v18  ;;  %v524_v25 = vmul.f32 0.5, %v492_v24  ;;  %v526_v32 = vmul.f32 0.5, %v494_v55 }
  0xb6   : > { %v646_v36 = vmul.f32 %v614_v5, %v3068_v9  ;;  %1840 = vmatmul.mubr.bf16.gmra.mxu1 %v675_v6  ;;  %v1660_v60 = vunpack.c.h.bf16 %v2770_v47  ;;  %v386_v45 = vmul.f32 0.5, %v1659_v43  ;;  %v431_v15 = vadd.f32 0.5, %v415_v31  ;;  %v2044_v11 = vpop.eup %2043 }
  0xb7   : > { %v3069_v46 = vunpack.c.l.bf16 %v2639_v0  ;;  %v584_v41 = vmul.f32 0.5, %v2042_v40  ;;  %2057 = vtanh.f32 %v524_v25  ;;  %v496_v51 = vunpack.c.l.bf16 %v2786_v59 }
  0xb8   : > { %v674_v14 = vpack.c.bf16 %v646_v36, %v644_v54  ;;  %v387_v33 = vmul.f32 0.5, %v1660_v60  ;;  %v498_v13 = vunpack.c.l.bf16 %v2789_v34  ;;  %v3070_v17 = vunpack.c.h.bf16 %v2639_v0  ;;  %v2046_v3 = vpop.eup %2045 }
  0xb9   : > { %v446_v16 = vmul.f32 %v3069_v46, %v430_v44  ;;  %v586_v27 = vmul.f32 0.5, %v2044_v11  ;;  %v616_v49 = vadd.f32 0.5, %v584_v41  ;;  %2059 = vtanh.f32 %v526_v32  ;;  %v2844_v41 = vld [vmem:[%s2542_s15 + $0x38] sm:$0xff]   ;;  %s2235_s15 = scalar_lea.vmem %s2234_s12, 2048 }
  0xba   : > { %943 = vmatprep.mubr.bf16.mxu0 %v674_v14  ;;  %v447_v57 = vmul.f32 %v3070_v17, %v431_v15  ;;  %2061 = vtanh.f32 %v386_v45  ;;  %v528_v10 = vmul.f32 0.5, %v496_v51  ;;  %v530_v58 = vmul.f32 0.5, %v498_v13  ;;  %v2048_v56 = vpop.eup %2047  ;;  %p2237_p12 = scmp.lt.s32.totalorder %s2235_s15, %s2229_s10 }
  0xbb   : > { %v1663_v19 = vunpack.c.l.bf16 %v2801_v26  ;;  %v618_v23 = vadd.f32 0.5, %v586_v27  ;;  %v3071_v61 = vunpack.c.l.bf16 %v2653_v7  ;;  %v416_v0 = vmul.f32 0.5, %v2046_v3  ;;  %v2050_v62 = vpop.eup %2049 }
  0xbc   : > { %v673_v37 = vpack.c.bf16 %v447_v57, %v446_v16  ;;  %2063 = vtanh.f32 %v387_v33  ;;  %v1664_v38 = vunpack.c.h.bf16 %v2801_v26  ;;  %v497_v52 = vunpack.c.h.bf16 %v2786_v59  ;;  %p2238_p1 = por %p2237_p12, %p2236_p9 }
  0xbd   : > { %v648_v28 = vmul.f32 %v616_v49, %v3071_v61  ;;  %v388_v21 = vmul.f32 0.5, %v1663_v19  ;;  %v3072_v29 = vunpack.c.l.bf16 %v2656_v8  ;;  %v417_v20 = vmul.f32 0.5, %v2048_v56  ;;  %v2052_v39 = vpop.eup %2051 }
  0xbe   : > { %v432_v1 = vadd.f32 0.5, %v416_v0  ;;  %2065 = vtanh.f32 %v528_v10  ;;  %944 = vmatmul.mubr.bf16.gmra.mxu0 %v673_v37  ;;  %v585_v22 = vmul.f32 0.5, %v2050_v62  ;;  %v389_v48 = vmul.f32 0.5, %v1664_v38  ;;  %p2239_p4 = pnand %p2238_p1, %p2232_p10 }
  0xbf   : > { %v650_v63 = vmul.f32 %v618_v23, %v3072_v29  ;;  %2067 = vtanh.f32 %v530_v58  ;;  %v499_v30 = vunpack.c.h.bf16 %v2789_v34  ;;  %v433_v5 = vadd.f32 0.5, %v417_v20 }
  0xc0   : > { %v3073_v42 = vunpack.c.l.bf16 %v2663_v12  ;;  %v587_v4 = vmul.f32 0.5, %v2052_v39  ;;  %v617_v6 = vadd.f32 0.5, %v585_v22  ;;  %2069 = vtanh.f32 %v388_v21 }
  0xc1   : > { %v677_v18 = vpack.c.bf16 %v650_v63, %v648_v28  ;;  %v529_v9 = vmul.f32 0.5, %v497_v52  ;;  %v531_v36 = vmul.f32 0.5, %v499_v30  ;;  %v2054_v31 = vpop.eup %2053  ;;  %v3074_v44 = vunpack.c.h.bf16 %v2663_v12 }
  0xc2   : > { %v448_v54 = vmul.f32 %v3073_v42, %v432_v1  ;;  %v619_v25 = vadd.f32 0.5, %v587_v4  ;;  %2071 = vtanh.f32 %v389_v48  ;;  %v501_v32 = vunpack.c.h.bf16 %v2826_v50  ;;  %v2056_v45 = vpop.eup %2055 }
  0xc3   : > { %951 = vmatprep.mubr.bf16.mxu0 %v677_v18  ;;  %v449_v40 = vmul.f32 %v3074_v44, %v433_v5  ;;  %v3075_v14 = vunpack.c.h.bf16 %v2653_v7  ;;  %v589_v46 = vmul.f32 0.5, %v2054_v31  ;;  %2073 = vtanh.f32 %v529_v9 }
  0xc4   : > { %v503_v16 = vunpack.c.h.bf16 %v2831_v35  ;;  %v3076_v33 = vunpack.c.h.bf16 %v2656_v8  ;;  %v591_v12 = vmul.f32 0.5, %v2056_v45  ;;  %2075 = vtanh.f32 %v531_v36  ;;  %v2058_v3 = vpop.eup %2057 }
  0xc5   : > { %v649_v15 = vmul.f32 %v617_v6, %v3075_v14  ;;  %v676_v11 = vpack.c.bf16 %v449_v40, %v448_v54  ;;  %v621_v57 = vadd.f32 0.5, %v589_v46  ;;  %v533_v27 = vmul.f32 0.5, %v501_v32 }
  0xc6   : > { %v651_v17 = vmul.f32 %v619_v25, %v3076_v33  ;;  %v535_v7 = vmul.f32 0.5, %v503_v16  ;;  %v500_v49 = vunpack.c.l.bf16 %v2826_v50  ;;  %v623_v58 = vadd.f32 0.5, %v591_v12  ;;  %v2060_v8 = vpop.eup %2059  ;;  %v1985_v50 = vld [vmem:[#allocation8 + $0x38] sm:$0xff]  }
  0xc7   : > { %v502_v37 = vunpack.c.l.bf16 %v2831_v35  ;;  %v1667_v23 = vunpack.c.l.bf16 %v2844_v41  ;;  %952 = vmatmul.mubr.bf16.gmra.mxu0 %v676_v11  ;;  %v3077_v61 = vunpack.c.h.bf16 %v2700_v53  ;;  %v588_v0 = vmul.f32 0.5, %v2058_v3  ;;  %v2062_v21 = vpop.eup %2061  ;;  %1851 = vmatprep.subr.bf16.mxu1 %v1985_v50  ;;  %v1987_v35 = vld [vmem:[#allocation8 + $0x28] sm:$0xff]  }
  0xc8   : > { %v678_v10 = vpack.c.bf16 %v651_v17, %v649_v15  ;;  %2077 = vtanh.f32 %v533_v27  ;;  %v532_v56 = vmul.f32 0.5, %v500_v49  ;;  %v3078_v62 = vunpack.c.h.bf16 %v2711_v2  ;;  %1852 = vmatpush3.bf16.msra.mxu1 %v1985_v50 }
  0xc9   : > { %v653_v28 = vmul.f32 %v621_v57, %v3077_v61  ;;  %v590_v63 = vmul.f32 0.5, %v2060_v8  ;;  %2079 = vtanh.f32 %v535_v7  ;;  %v534_v20 = vmul.f32 0.5, %v502_v37  ;;  %v2064_v48 = vpop.eup %2063 }
  0xca   : > { %1843 = vmatprep.mubr.bf16.mxu1 %v678_v10  ;;  %v655_v29 = vmul.f32 %v623_v58, %v3078_v62  ;;  %v620_v1 = vadd.f32 0.5, %v588_v0  ;;  %v418_v39 = vmul.f32 0.5, %v2062_v21  ;;  %2081 = vtanh.f32 %v532_v56 }
  0xcb   : > { %v1668_v22 = vunpack.c.h.bf16 %v2844_v41  ;;  %v622_v5 = vadd.f32 0.5, %v590_v63  ;;  %2083 = vtanh.f32 %v534_v20  ;;  %v390_v42 = vmul.f32 0.5, %v1667_v23  ;;  %v2066_v54 = vpop.eup %2065  ;;  %v1990_v41 = vld [vmem:[#allocation8 + $0x10] sm:$0xff]  }
  0xcc   : > { %v681_v18 = vpack.c.bf16 %v655_v29, %v653_v28  ;;  %v652_v4 = vmul.f32 %v620_v1, %v492_v24  ;;  %v419_v6 = vmul.f32 0.5, %v2064_v48  ;;  %v434_v9 = vadd.f32 0.5, %v418_v39  ;;  %v2068_v31 = vpop.eup %2067 }
  0xcd   : > { %v391_v36 = vmul.f32 0.5, %v1668_v22  ;;  %v654_v44 = vmul.f32 %v622_v5, %v494_v55  ;;  %v592_v40 = vmul.f32 0.5, %v2066_v54  ;;  %2085 = vtanh.f32 %v390_v42  ;;  %v2070_v53 = vpop.eup %2069 }
  0xce   : > { %1844 = vmatmul.mubr.bf16.gmra.mxu1 %v681_v18  ;;  %v435_v25 = vadd.f32 0.5, %v419_v6  ;;  %v450_v45 = vmul.f32 %v1659_v43, %v434_v9  ;;  %v594_v14 = vmul.f32 0.5, %v2068_v31  ;;  %v420_v17 = vmul.f32 0.5, %v2070_v53 }
  0xcf   : > { %2087 = vtanh.f32 %v391_v36  ;;  %v680_v24 = vpack.c.bf16 %v654_v44, %v652_v4  ;;  %v624_v15 = vadd.f32 0.5, %v592_v40  ;;  %v2072_v46 = vpop.eup %2071  ;;  %v1989_v40 = vld [vmem:[#allocation8 + $0x18] sm:$0xff]  }
  0xd0   : > { %v451_v11 = vmul.f32 %v1660_v60, %v435_v25  ;;  %v626_v33 = vadd.f32 0.5, %v594_v14  ;;  %v2074_v12 = vpop.eup %2073  ;;  %v421_v55 = vmul.f32 0.5, %v2072_v46  ;;  %v436_v7 = vadd.f32 0.5, %v420_v17  ;;  %v2903_v14 = vld [vmem:[%s3016_s3] ss:$0 sm:$0xff] }
  0xd1   : > { %959 = vmatprep.mubr.bf16.mxu0 %v680_v24  ;;  %v656_v2 = vmul.f32 %v624_v15, %v496_v51  ;;  %v2076_v57 = vpop.eup %2075  ;;  %v593_v3 = vmul.f32 0.5, %v2074_v12 }
  0xd2   : > { %v679_v27 = vpack.c.bf16 %v451_v11, %v450_v45  ;;  %v658_v43 = vmul.f32 %v626_v33, %v498_v13  ;;  %v437_v10 = vadd.f32 0.5, %v421_v55  ;;  %v595_v58 = vmul.f32 0.5, %v2076_v57 }
  0xd3   : > { %v452_v60 = vmul.f32 %v1663_v19, %v436_v7  ;;  %v625_v8 = vadd.f32 0.5, %v593_v3 }
  0xd4   : > { %960 = vmatmul.mubr.bf16.gmra.mxu0 %v679_v27  ;;  %v683_v47 = vpack.c.bf16 %v658_v43, %v656_v2  ;;  %v453_v51 = vmul.f32 %v1664_v38, %v437_v10  ;;  %v627_v28 = vadd.f32 0.5, %v595_v58 }
  0xd5   : > { %v2078_v61 = vpop.eup %2077  ;;  %v657_v13 = vmul.f32 %v625_v8, %v497_v52 }
  0xd6   : > { %v2080_v0 = vpop.eup %2079  ;;  %967 = vmatprep.mubr.bf16.mxu0 %v683_v47  ;;  %v597_v56 = vmul.f32 0.5, %v2078_v61  ;;  %v659_v62 = vmul.f32 %v627_v28, %v499_v30  ;;  %v682_v20 = vpack.c.bf16 %v453_v51, %v452_v60 }
  0xd7   : > { %v2082_v21 = vpop.eup %2081  ;;  %v599_v29 = vmul.f32 0.5, %v2080_v0 }
  0xd8   : > { %v2084_v63 = vpop.eup %2083  ;;  %v629_v19 = vadd.f32 0.5, %v597_v56  ;;  %v596_v1 = vmul.f32 0.5, %v2082_v21  ;;  %v684_v39 = vpack.c.bf16 %v659_v62, %v657_v13 }
  0xd9   : > { %v631_v48 = vadd.f32 0.5, %v599_v29  ;;  %v598_v26 = vmul.f32 0.5, %v2084_v63 }
  0xda   : > { %v2086_v38 = vpop.eup %2085  ;;  %v661_v18 = vmul.f32 %v629_v19, %v501_v32  ;;  %v628_v5 = vadd.f32 0.5, %v596_v1  ;;  %1847 = vmatprep.mubr.bf16.mxu1 %v684_v39 }
  0xdb   : > { %v663_v52 = vmul.f32 %v631_v48, %v503_v16  ;;  %v630_v34 = vadd.f32 0.5, %v598_v26  ;;  %v422_v30 = vmul.f32 0.5, %v2086_v38 }
  0xdc   : > { %v2088_v59 = vpop.eup %2087  ;;  %968 = vmatmul.mubr.bf16.gmra.mxu0 %v682_v20  ;;  %v660_v42 = vmul.f32 %v628_v5, %v500_v49  ;;  %v1986_v49 = vld [vmem:[#allocation8 + $0x30] sm:$0xff]  }
  0xdd   : > { %v423_v54 = vmul.f32 0.5, %v2088_v59  ;;  %v687_v4 = vpack.c.bf16 %v663_v52, %v661_v18  ;;  %v662_v6 = vmul.f32 %v630_v34, %v502_v37  ;;  %v438_v9 = vadd.f32 0.5, %v422_v30  ;;  %1853 = vmatprep.subr.bf16.mxu1 %v1986_v49  ;;  %v1988_v37 = vld [vmem:[#allocation8 + $0x20] sm:$0xff]  }
  0xde   : > { %1854 = vmatpush3.bf16.msra.mxu1 %v1986_v49 }
  0xdf   : > { %v439_v36 = vadd.f32 0.5, %v423_v54  ;;  %1848 = vmatmul.mubr.bf16.gmra.mxu1 %v687_v4  ;;  %v686_v32 = vpack.c.bf16 %v662_v6, %v660_v42  ;;  %v454_v31 = vmul.f32 %v1667_v23, %v438_v9  ;;  %1855 = vmatprep.subr.bf16.mxu1 %v1987_v35  ;;  %v1991_v23 = vld [vmem:[#allocation8 + $0x8] sm:$0xff]  }
  0xe1   : > { %v455_v16 = vmul.f32 %v1668_v22, %v439_v36  ;;  %975 = vmatprep.mubr.bf16.mxu0 %v686_v32  ;;  %v1992_v22 = vld [vmem:[#allocation8] sm:$0xff]  }
  0xe2   : > { %1856 = vmatpush3.bf16.msra.mxu1 %v1987_v35 }
  0xe3   : > { %v685_v44 = vpack.c.bf16 %v455_v16, %v454_v31  ;;  %1857 = vmatprep.subr.bf16.mxu1 %v1988_v37 }
  0xe5   : > { %976 = vmatmul.mubr.bf16.gmra.mxu0 %v685_v44 }
  0xe6   : > { %1858 = vmatpush3.bf16.msra.mxu1 %v1988_v37 }
  0xe7   : > { %1859 = vmatprep.subr.bf16.mxu1 %v1989_v40 }
  0xea   : > { %1860 = vmatpush3.bf16.msra.mxu1 %v1989_v40 }
  0xeb   : > { %1861 = vmatprep.subr.bf16.mxu1 %v1990_v41 }
  0xee   : > { %1862 = vmatpush3.bf16.msra.mxu1 %v1990_v41 }
  0xef   : > { %1863 = vmatprep.subr.bf16.mxu1 %v1991_v23 }
  0xf2   : > { %1864 = vmatpush3.bf16.msra.mxu1 %v1991_v23 }
  0xf3   : > { %1865 = vmatprep.subr.bf16.mxu1 %v1992_v22 }
  0xf6   : > { %1866 = vmatpush3.bf16.msra.mxu1 %v1992_v22 }
 0x164   : > { %v1739_v25 = vpop.f32.mrf.mxu0 }
 0x166   : > { %v1740_v45 = vpop.f32.mrf.mxu0 }
 0x167   : > { %v1741_v53 = vadd.f32 %v1740_v45, %v1739_v25 }
 0x168   : > { %v1742_v24 = vpop.f32.mrf.mxu0  ;;  %v1837_v15 = vpop.f32.mrf.mxu1 }
 0x169   : > { %v922_v46 = vadd.f32 %v1741_v53, %v2903_v14 }
 0x16a   : > { %v1743_v11 = vpop.f32.mrf.mxu0  ;;  %v1018_v33 = vpop.f32.mrf.mxu1 }
 0x16b   : > { %v1744_v17 = vadd.f32 %v1743_v11, %v1742_v24  ;;  %v1019_v12 = vadd.f32 %v1018_v33, %v922_v46 }
 0x16c   : > { %v1745_v2 = vpop.f32.mrf.mxu0  ;;  %v1838_v55 = vpop.f32.mrf.mxu1 }
 0x16d   : > { %v1081_v57 = vmul.f32 0.5, %v1019_v12  ;;  %v925_v27 = vadd.f32 %v1744_v17, %v2903_v14 }
 0x16e   : > { %v1746_v43 = vpop.f32.mrf.mxu0  ;;  %v1021_v7 = vpop.f32.mrf.mxu1 }
 0x16f   : > { %2089 = vtanh.f32 %v1081_v57  ;;  %v1747_v3 = vadd.f32 %v1746_v43, %v1745_v2  ;;  %v1022_v10 = vadd.f32 %v1021_v7, %v925_v27 }
 0x170   : > { %v1748_v58 = vpop.f32.mrf.mxu0 }
 0x171   : > { %v930_v47 = vadd.f32 %v1747_v3, %v2903_v14  ;;  %v1082_v60 = vmul.f32 0.5, %v1022_v10 }
 0x172   : > { %v1749_v8 = vpop.f32.mrf.mxu0 }
 0x173   : > { %v2908_v61 = vadd.f32 %v1837_v15, %v930_v47  ;;  %2091 = vtanh.f32 %v1082_v60  ;;  %v1750_v51 = vadd.f32 %v1749_v8, %v1748_v58 }
 0x174   : > { %v1751_v28 = vpop.f32.mrf.mxu0 }
 0x175   : > { %v1083_v13 = vmul.f32 0.5, %v2908_v61  ;;  %v933_v56 = vadd.f32 %v1750_v51, %v2903_v14 }
 0x176   : > { %v1841_v0 = vpop.f32.mrf.mxu1  ;;  %v1752_v21 = vpop.f32.mrf.mxu0 }
 0x177   : > { %2093 = vtanh.f32 %v1083_v13  ;;  %v1030_v29 = vadd.f32 %v1838_v55, %v933_v56  ;;  %v1753_v63 = vadd.f32 %v1752_v21, %v1751_v28 }
 0x178   : > { %v1034_v62 = vpop.f32.mrf.mxu1  ;;  %v1754_v20 = vpop.f32.mrf.mxu0 }
 0x179   : > { %v1084_v1 = vmul.f32 0.5, %v1030_v29  ;;  %v938_v39 = vadd.f32 %v1753_v63, %v2903_v14 }
 0x17a   : > { %v1842_v19 = vpop.f32.mrf.mxu1  ;;  %v1755_v48 = vpop.f32.mrf.mxu0 }
 0x17b   : > { %2095 = vtanh.f32 %v1084_v1  ;;  %v1756_v26 = vadd.f32 %v1755_v48, %v1754_v20  ;;  %v2913_v38 = vadd.f32 %v1034_v62, %v938_v39 }
 0x17c   : > { %v2090_v18 = vpop.eup %2089  ;;  %v1037_v59 = vpop.f32.mrf.mxu1 }
 0x17d   : > { %v1085_v52 = vmul.f32 0.5, %v2913_v38  ;;  %v941_v34 = vadd.f32 %v1756_v26, %v2903_v14  ;;  %v1113_v30 = vmul.f32 0.5, %v2090_v18 }
 0x17e   : > { %v1757_v5 = vpop.f32.mrf.mxu0 }
 0x17f   : > { %2097 = vtanh.f32 %v1085_v52  ;;  %v1038_v4 = vadd.f32 %v1037_v59, %v941_v34  ;;  %v1129_v16 = vadd.f32 0.5, %v1113_v30 }
 0x180   : > { %v1758_v42 = vpop.f32.mrf.mxu0  ;;  %v2092_v6 = vpop.eup %2091 }
 0x181   : > { %v1759_v54 = vadd.f32 %v1758_v42, %v1757_v5  ;;  %v1114_v36 = vmul.f32 0.5, %v2092_v6  ;;  %v1086_v31 = vmul.f32 0.5, %v1038_v4  ;;  %v1145_v45 = vmul.f32 %v1129_v16, %v1019_v12 }
 0x182   : > { %v1760_v9 = vpop.f32.mrf.mxu0 }
 0x183   : > { %v946_v32 = vadd.f32 %v1759_v54, %v2903_v14  ;;  %v1130_v50 = vadd.f32 0.5, %v1114_v36  ;;  %2099 = vtanh.f32 %v1086_v31 }
 0x184   : > { %v1761_v44 = vpop.f32.mrf.mxu0  ;;  %v2094_v37 = vpop.eup %2093 }
 0x185   : > { %v2918_v49 = vadd.f32 %v1841_v0, %v946_v32  ;;  %v1762_v35 = vadd.f32 %v1761_v44, %v1760_v9  ;;  %v1115_v41 = vmul.f32 0.5, %v2094_v37  ;;  %v1146_v23 = vmul.f32 %v1130_v50, %v1022_v10 }
 0x187   : > { %v1763_v40 = vpop.f32.mrf.mxu0  ;;  %v1087_v22 = vmul.f32 0.5, %v2918_v49  ;;  %v949_v25 = vadd.f32 %v1762_v35, %v2903_v14  ;;  %v1161_v33 = vpack.c.bf16 %v1146_v23, %v1145_v45  ;;  %v1131_v17 = vadd.f32 0.5, %v1115_v41 }
 0x188   : > { %v2096_v46 = vpop.eup %2095 }
 0x189   : > { %v1764_v53 = vpop.f32.mrf.mxu0  ;;  %2101 = vtanh.f32 %v1087_v22  ;;  %v2922_v24 = vadd.f32 %v1842_v19, %v949_v25  ;;  %v1116_v2 = vmul.f32 0.5, %v2096_v46  ;;  %1867 = vmatprep.mubr.bf16.mxu1 %v1161_v33  ;;  %v1147_v47 = vmul.f32 %v1131_v17, %v2908_v61 }
 0x18a   : > { %v1765_v15 = vadd.f32 %v1764_v53, %v1763_v40 }
 0x18b   : > { %v1766_v11 = vpop.f32.mrf.mxu0  ;;  %v1088_v55 = vmul.f32 0.5, %v2922_v24  ;;  %v1132_v7 = vadd.f32 0.5, %v1116_v2 }
 0x18c   : > { %v954_v27 = vadd.f32 %v1765_v15, %v2903_v14  ;;  %v2098_v10 = vpop.eup %2097 }
 0x18d   : > { %v1767_v43 = vpop.f32.mrf.mxu0  ;;  %2103 = vtanh.f32 %v1088_v55  ;;  %v1148_v60 = vmul.f32 %v1132_v7, %v1030_v29  ;;  %v1117_v8 = vmul.f32 0.5, %v2098_v10 }
 0x18e   : > { %v1845_v57 = vpop.f32.mrf.mxu1  ;;  %v1768_v12 = vadd.f32 %v1767_v43, %v1766_v11 }
 0x18f   : > { %v1162_v13 = vpack.c.bf16 %v1148_v60, %v1147_v47  ;;  %v1133_v20 = vadd.f32 0.5, %v1117_v8 }
 0x190   : > { %v1050_v3 = vpop.f32.mrf.mxu1  ;;  %v957_v28 = vadd.f32 %v1768_v12, %v2903_v14  ;;  %v2100_v21 = vpop.eup %2099 }
 0x191   : > { %v2926_v58 = vadd.f32 %v1050_v3, %v954_v27  ;;  %v1118_v19 = vmul.f32 0.5, %v2100_v21  ;;  %1868 = vmatmul.mubr.bf16.vlgmr.msra.gmra.mxu1 %v1162_v13  ;;  %v1149_v18 = vmul.f32 %v1133_v20, %v2913_v38 }
 0x192   : > { %v1846_v51 = vpop.f32.mrf.mxu1 }
 0x193   : > { %v1089_v0 = vmul.f32 0.5, %v2926_v58  ;;  %v1134_v29 = vadd.f32 0.5, %v1118_v19 }
 0x194   : > { %v1053_v56 = vpop.f32.mrf.mxu1  ;;  %v1769_v62 = vpop.f32.mrf.mxu0 }
 0x195   : > { %2105 = vtanh.f32 %v1089_v0  ;;  %v2931_v63 = vadd.f32 %v1053_v56, %v957_v28  ;;  %v1150_v5 = vmul.f32 %v1134_v29, %v1038_v4 }
 0x196   : > { %v1770_v1 = vpop.f32.mrf.mxu0  ;;  %v2102_v48 = vpop.eup %2101 }
 0x197   : > { %v1090_v61 = vmul.f32 0.5, %v2931_v63  ;;  %v1771_v39 = vadd.f32 %v1770_v1, %v1769_v62  ;;  %v1119_v52 = vmul.f32 0.5, %v2102_v48  ;;  %v1163_v54 = vpack.c.bf16 %v1150_v5, %v1149_v18 }
 0x198   : > { %v1772_v26 = vpop.f32.mrf.mxu0 }
 0x199   : > { %2107 = vtanh.f32 %v1090_v61  ;;  %v962_v59 = vadd.f32 %v1771_v39, %v2903_v14  ;;  %1871 = vmatprep.mubr.bf16.mxu1 %v1163_v54  ;;  %v1135_v16 = vadd.f32 0.5, %v1119_v52 }
 0x19a   : > { %v1773_v34 = vpop.f32.mrf.mxu0  ;;  %v2104_v6 = vpop.eup %2103 }
 0x19b   : > { %v2936_v30 = vadd.f32 %v1845_v57, %v962_v59  ;;  %v1774_v42 = vadd.f32 %v1773_v34, %v1772_v26  ;;  %v1120_v31 = vmul.f32 0.5, %v2104_v6  ;;  %v1151_v25 = vmul.f32 %v1135_v16, %v2918_v49 }
 0x19c   : > { %v1775_v9 = vpop.f32.mrf.mxu0 }
 0x19d   : > { %v1091_v36 = vmul.f32 0.5, %v2936_v30  ;;  %v965_v32 = vadd.f32 %v1774_v42, %v2903_v14  ;;  %v1136_v35 = vadd.f32 0.5, %v1120_v31 }
 0x19e   : > { %v1776_v44 = vpop.f32.mrf.mxu0 }
 0x19f   : > { %2109 = vtanh.f32 %v1091_v36  ;;  %v1062_v38 = vadd.f32 %v1846_v51, %v965_v32  ;;  %v1777_v4 = vadd.f32 %v1776_v44, %v1775_v9  ;;  %v1849_v50 = vpop.f32.mrf.mxu1  ;;  %v1152_v45 = vmul.f32 %v1136_v35, %v2922_v24 }
 0x1a0   : > { %v1778_v37 = vpop.f32.mrf.mxu0 }
 0x1a1   : > { %v1092_v41 = vmul.f32 0.5, %v1062_v38  ;;  %v970_v23 = vadd.f32 %v1777_v4, %v2903_v14  ;;  %v1066_v22 = vpop.f32.mrf.mxu1  ;;  %v1164_v17 = vpack.c.bf16 %v1152_v45, %v1151_v25 }
 0x1a2   : > { %v2106_v40 = vpop.eup %2105  ;;  %v1779_v15 = vpop.f32.mrf.mxu0 }
 0x1a3   : > { %v1121_v53 = vmul.f32 0.5, %v2106_v40  ;;  %2111 = vtanh.f32 %v1092_v41  ;;  %v1780_v46 = vadd.f32 %v1779_v15, %v1778_v37  ;;  %v1067_v11 = vadd.f32 %v1066_v22, %v970_v23  ;;  %v1850_v33 = vpop.f32.mrf.mxu1  ;;  %1872 = vmatmul.mubr.bf16.gmra.mxu1 %v1164_v17  ;;  %v1185_v41 = vld [vmem:[%s3018_s5] sm:$0x1] }
 0x1a4   : > { %v1186_v23 = vunpack.c.l.bf16 %v1185_v41 }
 0x1a5   : > { %v1781_v2 = vpop.f32.mrf.mxu0  ;;  %v1093_v57 = vmul.f32 0.5, %v1067_v11  ;;  %v973_v27 = vadd.f32 %v1780_v46, %v2903_v14  ;;  %v1069_v43 = vpop.f32.mrf.mxu1  ;;  %v1137_v7 = vadd.f32 0.5, %v1121_v53 }
 0x1a6   : > { %v2108_v55 = vpop.eup %2107 }
 0x1a7   : > { %v1122_v12 = vmul.f32 0.5, %v2108_v55  ;;  %v1782_v3 = vpop.f32.mrf.mxu0  ;;  %2113 = vtanh.f32 %v1093_v57  ;;  %v1070_v24 = vadd.f32 %v1069_v43, %v973_v27  ;;  %v1153_v51 = vmul.f32 %v1137_v7, %v2926_v58 }
 0x1a8   : > { %v1783_v49 = vadd.f32 %v1782_v3, %v1781_v2 }
 0x1a9   : > { %v1138_v10 = vadd.f32 0.5, %v1122_v12  ;;  %v1784_v47 = vpop.f32.mrf.mxu0  ;;  %v1094_v8 = vmul.f32 0.5, %v1070_v24 }
 0x1aa   : > { %v978_v60 = vadd.f32 %v1783_v49, %v2903_v14 }
 0x1ab   : > { %v1154_v28 = vmul.f32 %v1138_v10, %v2931_v63  ;;  %v1785_v0 = vpop.f32.mrf.mxu0  ;;  %2115 = vtanh.f32 %v1094_v8 }
 0x1ac   : > { %v1075_v13 = vadd.f32 %v1849_v50, %v978_v60  ;;  %v1786_v56 = vadd.f32 %v1785_v0, %v1784_v47  ;;  %v2110_v21 = vpop.eup %2109 }
 0x1ad   : > { %v1165_v62 = vpack.c.bf16 %v1154_v28, %v1153_v51  ;;  %v1123_v1 = vmul.f32 0.5, %v2110_v21 }
 0x1ae   : > { %v1095_v20 = vmul.f32 0.5, %v1075_v13  ;;  %v981_v19 = vadd.f32 %v1786_v56, %v2903_v14 }
 0x1af   : > { %1875 = vmatprep.mubr.bf16.mxu1 %v1165_v62  ;;  %v1139_v26 = vadd.f32 0.5, %v1123_v1 }
 0x1b0   : > { %2117 = vtanh.f32 %v1095_v20  ;;  %v1078_v61 = vadd.f32 %v1850_v33, %v981_v19  ;;  %v2112_v29 = vpop.eup %2111 }
 0x1b1   : > { %v1124_v48 = vmul.f32 0.5, %v2112_v29  ;;  %v1155_v5 = vmul.f32 %v1139_v26, %v2936_v30 }
 0x1b2   : > { %v1096_v39 = vmul.f32 0.5, %v1078_v61 }
 0x1b3   : > { %v1140_v58 = vadd.f32 0.5, %v1124_v48 }
 0x1b4   : > { %2119 = vtanh.f32 %v1096_v39  ;;  %v2114_v63 = vpop.eup %2113 }
 0x1b5   : > { %v1125_v18 = vmul.f32 0.5, %v2114_v63  ;;  %v1156_v59 = vmul.f32 %v1140_v58, %v1062_v38  ;;  %v1187_v38 = vlaneseq }
 0x1b7   : > { %v1166_v52 = vpack.c.bf16 %v1156_v59, %v1155_v5  ;;  %v1141_v42 = vadd.f32 0.5, %v1125_v18  ;;  %v1188_v40 = vshrl.u32 %v1187_v38, 7 }
 0x1b8   : > { %v2116_v34 = vpop.eup %2115 }
 0x1b9   : > { %v1126_v54 = vmul.f32 0.5, %v2116_v34  ;;  %1876 = vmatmul.mubr.bf16.gmra.mxu1 %v1166_v52  ;;  %v1157_v9 = vmul.f32 %v1141_v42, %v1067_v11  ;;  %v1189_v22 = vsub.s32 0, %v1188_v40 }
 0x1bb   : > { %v1142_v14 = vadd.f32 0.5, %v1126_v54  ;;  %v1190_v45 = vrot.slane %v1186_v23, %v1189_v22 }
 0x1bd   : > { %v2118_v6 = vpop.eup %2117  ;;  %v1158_v36 = vmul.f32 %v1142_v14, %v1070_v24 }
 0x1be   : > { %v1127_v32 = vmul.f32 0.5, %v2118_v6 }
 0x1bf   : > { %v1167_v31 = vpack.c.bf16 %v1158_v36, %v1157_v9 }
 0x1c0   : > { %v1143_v4 = vadd.f32 0.5, %v1127_v32 }
 0x1c1   : > { %v2120_v16 = vpop.eup %2119  ;;  %1879 = vmatprep.mubr.bf16.mxu1 %v1167_v31 }
 0x1c2   : > { %v1128_v44 = vmul.f32 0.5, %v2120_v16  ;;  %v1159_v35 = vmul.f32 %v1143_v4, %v1075_v13 }
 0x1c4   : > { %v1144_v50 = vadd.f32 0.5, %v1128_v44 }
 0x1c6   : > { %v1160_v37 = vmul.f32 %v1144_v50, %v1078_v61 }
 0x1c8   : > { %v1168_v30 = vpack.c.bf16 %v1160_v37, %v1159_v35 }
 0x1ca   : > { %1880 = vmatmul.mubr.bf16.gmra.mxu1 %v1168_v30 }
 0x251   : > { %v1869_v25 = vpop.f32.mrf.mxu1 }
 0x252   : > { %v1282_v46 = vadd.f32 %v1869_v25, %v1190_v45 }
 0x253   : > { %v1273_v53 = vpop.f32.mrf.mxu1 }
 0x254   : > { %v1274_v17 = vadd.f32 %v1273_v53, %v1190_v45 }
 0x255   : > { %v1870_v15 = vpop.f32.mrf.mxu1 }
 0x256   : > { %v1285_v11 = vadd.f32 %v1870_v15, %v1190_v45 }
 0x257   : > { %v1276_v33 = vpop.f32.mrf.mxu1 }
 0x258   : > { %v1677_v2 = vpack.c.bf16 %v1285_v11, %v1282_v46  ;;  %v1277_v55 = vadd.f32 %v1276_v33, %v1190_v45 }
 0x25a   : > { %1716 = vst [vmem:[%s2954_s13 + $0x8] sm:$0xff] %v1677_v2   ;;  %v1672_v57 = vpack.c.bf16 %v1277_v55, %v1274_v17 }
 0x25c   : > { %1673 = vst [vmem:[%s2954_s13] sm:$0xff] %v1672_v57  }
 0x263   : > { %v1873_v27 = vpop.f32.mrf.mxu1 }
 0x264   : > { %v1298_v12 = vadd.f32 %v1873_v27, %v1190_v45 }
 0x265   : > { %v1289_v43 = vpop.f32.mrf.mxu1 }
 0x266   : > { %v1290_v24 = vadd.f32 %v1289_v43, %v1190_v45 }
 0x267   : > { %v1874_v7 = vpop.f32.mrf.mxu1 }
 0x268   : > { %v1301_v3 = vadd.f32 %v1874_v7, %v1190_v45 }
 0x269   : > { %v1292_v49 = vpop.f32.mrf.mxu1 }
 0x26a   : > { %v1687_v10 = vpack.c.bf16 %v1301_v3, %v1298_v12  ;;  %v1293_v47 = vadd.f32 %v1292_v49, %v1190_v45 }
 0x26c   : > { %1718 = vst [vmem:[%s2954_s13 + $0x18] sm:$0xff] %v1687_v10   ;;  %v1682_v60 = vpack.c.bf16 %v1293_v47, %v1290_v24 }
 0x26e   : > { %1717 = vst [vmem:[%s2954_s13 + $0x10] sm:$0xff] %v1682_v60  }
 0x279   : > { %v1877_v8 = vpop.f32.mrf.mxu1 }
 0x27a   : > { %v1314_v0 = vadd.f32 %v1877_v8, %v1190_v45 }
 0x27b   : > { %v1305_v51 = vpop.f32.mrf.mxu1 }
 0x27c   : > { %v1306_v21 = vadd.f32 %v1305_v51, %v1190_v45 }
 0x27d   : > { %v1878_v28 = vpop.f32.mrf.mxu1 }
 0x27e   : > { %v1317_v13 = vadd.f32 %v1878_v28, %v1190_v45 }
 0x27f   : > { %v1308_v56 = vpop.f32.mrf.mxu1 }
 0x280   : > { %v1697_v62 = vpack.c.bf16 %v1317_v13, %v1314_v0  ;;  %v1309_v20 = vadd.f32 %v1308_v56, %v1190_v45 }
 0x282   : > { %1720 = vst [vmem:[%s2954_s13 + $0x28] sm:$0xff] %v1697_v62   ;;  %v1692_v19 = vpack.c.bf16 %v1309_v20, %v1306_v21 }
 0x284   : > { %1719 = vst [vmem:[%s2954_s13 + $0x20] sm:$0xff] %v1692_v19  }
 0x28a   : > { %v1881_v1 = vpop.f32.mrf.mxu1 }
 0x28b   : > { %v1330_v39 = vadd.f32 %v1881_v1, %v1190_v45 }
 0x28c   : > { %v1321_v61 = vpop.f32.mrf.mxu1 }
 0x28d   : > { %v1322_v58 = vadd.f32 %v1321_v61, %v1190_v45 }
 0x28e   : > { %v1882_v29 = vpop.f32.mrf.mxu1 }
 0x28f   : > { %v1333_v48 = vadd.f32 %v1882_v29, %v1190_v45 }
 0x290   : > { %v1324_v26 = vpop.f32.mrf.mxu1 }
 0x291   : > { %v1707_v63 = vpack.c.bf16 %v1333_v48, %v1330_v39  ;;  %v1325_v18 = vadd.f32 %v1324_v26, %v1190_v45 }
 0x293   : > { %1722 = vst [vmem:[%s2954_s13 + $0x38] sm:$0xff] %v1707_v63   ;;  %v1702_v5 = vpack.c.bf16 %v1325_v18, %v1322_v58 }
 0x295   : > { %1721 = vst [vmem:[%s2954_s13 + $0x30] sm:$0xff] %v1702_v5  }
 0x296   : > { %2242 = shalt.err (!%p2239_p4)
}
 0x297   : > { %s2243_s0 = scalar_lea.hbm %s2969_s7, 1024  ;;  %s2247_s18 = scalar_lea.hbm %s3019_s6, 4096 }
 0x298   : > { %p2244_p3 = scmp.ne.s32.totalorder %s2969_s7, %s2243_s0  ;;  %p2248_p2 = scmp.lt.s32.totalorder %s2969_s7, %s3019_s6 }
 0x299   : > { %p2249_p6 = scmp.lt.s32.totalorder %s2247_s18, %s2243_s0 }
 0x29a   : > { %p2245_p7 = pnand %p2244_p3, %p3079_p0 }
 0x29b   : > { %p2250_p11 = por %p2249_p6, %p2248_p2 }
 0x29c   : > { %p2246_p8 = pneg %p2245_p7 }
 0x29e   : > { %p2251_p13 = pnand %p2250_p11, %p2246_p8 }
 0x2a0   : > { %2254 = shalt.err (!%p2251_p13)
}
 0x2a1   : > { %s2316_s8 = smov 64   ;;  %s2317_s17 = smov 4  }
 0x2a2   : > { %1895 = dma.vmem_to_hbm [thread:$0]  (%p3079_p0), %s2964_s2, 1024, %s2969_s7, %s1417_s20, %s2316_s8, %s2316_s8, %s2317_s17  }
 0x2a3 PF: > { %p1920_p5 = scmp.ge.s32.totalorder %s2305_s24, 2  ;;  %s1445_s13 = sand.u32 1, %s2293_s21  }
 0x2a4   : > { %p3080_p10 = scmp.ne.s32.totalorder %s3043_s28, 0  ;;  %s1446_s11 = scalar_lea.sflag [#allocation4], %s1445_s13 }
 0x2a6   : > { %p1912_p9 = pnand %p1920_p5, %p3080_p10 }
 0x2a8   : > { %p1913_p12 = pneg %p1912_p9 }
 0x2aa   : > { %2288 = dma.done.wait (%p1913_p12), %s1446_s11, 1024  }
 0x2ab   : > { %2290 = vsyncadd (%p1913_p12), %s1446_s11, 4294966272  ;;  %s3081_s14 = sld [smem:[#allocation16_spill]]  ;;  %p23_p1 = scmp.ge.s32.totalorder %s2430_s19, 6  }
 0x2ac   : > { %s3082_s21 = smov %s2297_s22  ;;  %s3083_s22 = smov %s2301_s23 }
 0x2ad   : > { %s3085_s24 = smov %s2430_s19  ;;  %25 = sbr.rel (!%p23_p1) target bundleno = 12 (0xc), region = 110 }
 0x2b1   : > { %s3084_s23 = smov %s3081_s14 }
 0x2b2   :  { %1451 = vsyncpa [#allocation3], 1 }
 0x2b3   :  { %1453 = vsyncpa [#allocation3 + $0x1], 1 }
 0x2b4   :  { %1454 = vsyncpa [#allocation6], 1 }
 0x2b5   :  { %1456 = vsyncpa [#allocation6 + $0x1], 1 }
 0x2b6   :  { %1457 = vsyncpa [#allocation9], 1 }
 0x2b7   :  { %1458 = vsyncpa [#allocation4], 1 }
 0x2b8   :  { %1460 = vsyncpa [#allocation4 + $0x1], 1 }

</bundles_post_ra>
